<compile_context>
chip_gen: v6e
topology: v6e:2x2x1
jax: 0.10.0
libtpu: 0.0.40
codegen_flags: <defaults>
</compile_context>

<pallas_src>
import functools
import math

import jax
import jax.numpy as jnp
from jax.experimental import pallas as pl
from jax.experimental.pallas import tpu as pltpu


def _layernorm(x, g, b, eps):
    mu = jnp.mean(x, axis=-1, keepdims=True)
    xc = x - mu
    var = jnp.mean(xc * xc, axis=-1, keepdims=True)
    return xc * jax.lax.rsqrt(var + eps) * g + b


# --------------------- kernel 1: embedding LayerNorm ------------------------


def _embed_ln_kernel(x_ref, g_ref, b_ref, o_ref, *, eps):
    o_ref[...] = _layernorm(x_ref[...], g_ref[...], b_ref[...], eps)


def embed_layernorm(x, gamma, beta, eps=1e-12):
    M, H = x.shape
    return pl.pallas_call(
        functools.partial(_embed_ln_kernel, eps=eps),
        grid=(1,),
        out_shape=jax.ShapeDtypeStruct((M, H), jnp.float32),
        in_specs=[
            pl.BlockSpec((M, H), lambda i: (0, 0)),
            pl.BlockSpec((1, H), lambda i: (0, 0)),
            pl.BlockSpec((1, H), lambda i: (0, 0)),
        ],
        out_specs=pl.BlockSpec((M, H), lambda i: (0, 0)),
    )(x, gamma.reshape(1, H), beta.reshape(1, H))


# ---------------- kernel 2: fully fused transformer layer -------------------


def _encoder_layer_kernel(x_ref, wqkv_ref, bqkv_ref, wo_ref, bo_ref,
                          ln1g_ref, ln1b_ref, w1_ref, b1_ref, w2_ref, b2_ref,
                          ln2g_ref, ln2b_ref, o_ref, *, n_seqs, seq, heads, eps):
    x = x_ref[...]                                   # (M, H), M = n_seqs * seq
    M, H = x.shape
    dh = H // heads
    scale = 1.0 / math.sqrt(dh)

    # Fused QKV projection: one MXU pass over x, lane-dense (M, 3H) result.
    qkv = jnp.dot(x, wqkv_ref[...], preferred_element_type=jnp.float32) + bqkv_ref[...]

    # Multi-head self-attention (heads statically unrolled; no HBM round-trip).
    ctx_heads = []
    for hh in range(heads):
        q = qkv[:, hh * dh:(hh + 1) * dh].reshape(n_seqs, seq, dh)
        k = qkv[:, H + hh * dh:H + (hh + 1) * dh].reshape(n_seqs, seq, dh)
        v = qkv[:, 2 * H + hh * dh:2 * H + (hh + 1) * dh].reshape(n_seqs, seq, dh)
        s = jnp.einsum('bqd,bkd->bqk', q, k,
                       preferred_element_type=jnp.float32) * scale
        s = s - jnp.max(s, axis=-1, keepdims=True)
        p = jnp.exp(s)
        p = p * pl.reciprocal(jnp.sum(p, axis=-1, keepdims=True), approx=True)
        ctx_heads.append(jnp.einsum('bqk,bkd->bqd', p, v,
                                    preferred_element_type=jnp.float32))
    ctx = jnp.concatenate(ctx_heads, axis=-1).reshape(M, H)

    # Output projection + residual + LayerNorm (fused epilogue).
    attn_out = jnp.dot(ctx, wo_ref[...], preferred_element_type=jnp.float32) + bo_ref[...]
    h1 = _layernorm(attn_out + x, ln1g_ref[...], ln1b_ref[...], eps)

    # Fused FFN: w1 + gelu + w2 + residual + LayerNorm.
    ff = jnp.dot(h1, w1_ref[...], preferred_element_type=jnp.float32) + b1_ref[...]
    # TODO(synk): HuggingFace BERT uses the exact (erf) GELU; tanh approx kept here.
    ff = jax.nn.gelu(ff, approximate=True)
    ff = jnp.dot(ff, w2_ref[...], preferred_element_type=jnp.float32) + b2_ref[...]
    o_ref[...] = _layernorm(ff + h1, ln2g_ref[...], ln2b_ref[...], eps)


def encoder_layer(x, layer, *, n_seqs, seq, heads, eps=1e-12):
    M, H = x.shape
    F = layer["w1"].shape[1]

    def full(r, c):
        return pl.BlockSpec((r, c), lambda i: (0, 0))

    return pl.pallas_call(
        functools.partial(_encoder_layer_kernel, n_seqs=n_seqs, seq=seq,
                          heads=heads, eps=eps),
        grid=(1,),
        out_shape=jax.ShapeDtypeStruct((M, H), jnp.float32),
        in_specs=[
            full(M, H),            # x
            full(H, 3 * H),        # wqkv (wq|wk|wv)
            full(1, 3 * H),        # bqkv
            full(H, H),            # wo
            full(1, H),            # bo
            full(1, H),            # ln1_g
            full(1, H),            # ln1_b
            full(H, F),            # w1
            full(1, F),            # b1
            full(F, H),            # w2
            full(1, H),            # b2
            full(1, H),            # ln2_g
            full(1, H),            # ln2_b
        ],
        out_specs=full(M, H),
        compiler_params=pltpu.CompilerParams(dimension_semantics=("arbitrary",)),
    )(x,
      layer["wqkv"], layer["bqkv"].reshape(1, 3 * H),
      layer["wo"], layer["bo"].reshape(1, H),
      layer["ln1_g"].reshape(1, H), layer["ln1_b"].reshape(1, H),
      layer["w1"], layer["b1"].reshape(1, F),
      layer["w2"], layer["b2"].reshape(1, H),
      layer["ln2_g"].reshape(1, H), layer["ln2_b"].reshape(1, H))


# ------------- kernel 3: pooler (tanh) + dual Bilinear head -----------------


def _head_kernel(cls_ref, pw_ref, pb_ref, fcw_ref, fcb_ref, o_ref):
    pw = pw_ref[...]
    pb = pb_ref[...]

    def pool(t):
        return jnp.tanh(jnp.dot(t, pw, preferred_element_type=jnp.float32) + pb)

    a = pool(cls_ref[0])           # pooled A, (B, H)
    b = pool(cls_ref[1])           # pooled B, (B, H)
    c = pool(cls_ref[2])           # pooled C, (B, H)
    # Bilinear(A, X) = sum_ij A[n,i] W[i,j] X[n,j] + bias; compute A @ W once.
    t = jnp.dot(a, fcw_ref[...], preferred_element_type=jnp.float32)
    ab = jnp.sum(t * b, axis=-1, keepdims=True)
    ac = jnp.sum(t * c, axis=-1, keepdims=True)
    o_ref[...] = jnp.concatenate([ab, ac], axis=-1) + fcb_ref[...]


def pooler_bilinear_head(cls3, pooler_w, pooler_b, fc_w, fc_b):
    _, B, H = cls3.shape
    return pl.pallas_call(
        _head_kernel,
        grid=(1,),
        out_shape=jax.ShapeDtypeStruct((B, 2), jnp.float32),
        in_specs=[
            pl.BlockSpec((3, B, H), lambda i: (0, 0, 0)),
            pl.BlockSpec((H, H), lambda i: (0, 0)),
            pl.BlockSpec((1, H), lambda i: (0, 0)),
            pl.BlockSpec((H, H), lambda i: (0, 0)),
            pl.BlockSpec((1, 1), lambda i: (0, 0)),
        ],
        out_specs=pl.BlockSpec((B, 2), lambda i: (0, 0)),
    )(cls3, pooler_w, pooler_b.reshape(1, H), fc_w, fc_b.reshape(1, 1))


# ------------------------------- forward ------------------------------------


def model_forward(params, ids_a, ids_b, ids_c, *, hidden, heads):
    B, S = ids_a.shape
    # Batch the three encoder passes into one (3*B, S) pass.
    ids = jnp.concatenate([ids_a, ids_b, ids_c], axis=0)
    NB = 3 * B

    emb = params["emb"]
    x = (emb["word"][ids]
         + emb["pos"][:S][None, :, :]
         + emb["type"][0][None, None, :])
    x = x.reshape(NB * S, hidden).astype(jnp.float32)
    x = embed_layernorm(x, emb["ln_g"], emb["ln_b"])

    for layer in params["layers"]:
        x = encoder_layer(x, layer, n_seqs=NB, seq=S, heads=heads)

    cls = x.reshape(NB, S, hidden)[:, 0, :]          # [CLS] token, (3*B, H)
    cls3 = cls.reshape(3, B, hidden)                 # [A; B; C]
    return pooler_bilinear_head(cls3, params["pooler_w"], params["pooler_b"],
                                params["fc_w"], params["fc_b"])


# ----------------------------- parameter init -------------------------------


def init_params(key, vocab=100, hidden=32, heads=4, n_layers=2, ffn=64, max_pos=64):
    # deterministic synthetic weights (scaled-down BERT: 768 -> `hidden`)
    keys = iter(jax.random.split(key, 200))
    nrm = lambda shape, s=0.02: (s * jax.random.normal(next(keys), shape)).astype(jnp.float32)

    params = {
        "emb": {
            "word": nrm((vocab, hidden)),
            "pos": nrm((max_pos, hidden)),
            "type": nrm((2, hidden)),
            "ln_g": jnp.ones((hidden,), jnp.float32),
            "ln_b": jnp.zeros((hidden,), jnp.float32),
        },
        "layers": [],
        "pooler_w": nrm((hidden, hidden)),
        "pooler_b": jnp.zeros((hidden,), jnp.float32),
        # nn.Bilinear(768, 768, 1): weight (1, H, H) -> store the (H, H) slice
        "fc_w": nrm((hidden, hidden), 0.05),
        "fc_b": nrm((1,), 0.05),
    }
    for _ in range(n_layers):
        wq, wk, wv = nrm((hidden, hidden)), nrm((hidden, hidden)), nrm((hidden, hidden))
        params["layers"].append({
            "wqkv": jnp.concatenate([wq, wk, wv], axis=1),       # (H, 3H)
            "bqkv": jnp.zeros((3 * hidden,), jnp.float32),
            "wo": nrm((hidden, hidden)), "bo": jnp.zeros((hidden,), jnp.float32),
            "ln1_g": jnp.ones((hidden,), jnp.float32),
            "ln1_b": jnp.zeros((hidden,), jnp.float32),
            "w1": nrm((hidden, ffn)), "b1": jnp.zeros((ffn,), jnp.float32),
            "w2": nrm((ffn, hidden)), "b2": jnp.zeros((hidden,), jnp.float32),
            "ln2_g": jnp.ones((hidden,), jnp.float32),
            "ln2_b": jnp.zeros((hidden,), jnp.float32),
        })
    return params


# ----------------------------------- main ------------------------------------

if __name__ == "__main__":
    key = jax.random.PRNGKey(0)
    pkey, ka, kb, kc = jax.random.split(key, 4)

    batch, seq, vocab, hidden, heads = 2, 8, 100, 32, 4
    params = init_params(pkey, vocab=vocab, hidden=hidden, heads=heads,
                         n_layers=2, ffn=64)

    ids_a = jax.random.randint(ka, (batch, seq), 0, vocab, dtype=jnp.int32)
    ids_b = jax.random.randint(kb, (batch, seq), 0, vocab, dtype=jnp.int32)
    ids_c = jax.random.randint(kc, (batch, seq), 0, vocab, dtype=jnp.int32)

    fwd = jax.jit(functools.partial(model_forward, hidden=hidden, heads=heads))
    out = fwd(params, ids_a, ids_b, ids_c)
    out = jax.block_until_ready(out)
    assert out.shape == (batch, 2) and out.dtype == jnp.float32
    print("KERNEL_OK")
</pallas_src>

<mosaic_0001>
module attributes {stable_mosaic.version = 11 : i64} {
  func.func @_embed_ln_kernel(%arg0: i32, %arg1: memref<48x32xf32, #tpu.memory_space<vmem>>, %arg2: memref<1x32xf32, #tpu.memory_space<vmem>>, %arg3: memref<1x32xf32, #tpu.memory_space<vmem>>, %arg4: memref<48x32xf32, #tpu.memory_space<vmem>>) attributes {dimension_semantics = [#tpu.dimension_semantics<arbitrary>], iteration_bounds = array<i64: 1>, scalar_prefetch = 0 : i64, scratch_operands = 0 : i64, tpu.core_type = #tpu.core_type<tc>, window_params = [{pipeline_mode = #tpu.pipeline_mode<synchronous>, transform_indices = @transform_0, window_bounds = array<i64: 48, 32>}, {pipeline_mode = #tpu.pipeline_mode<synchronous>, transform_indices = @transform_1, window_bounds = array<i64: 1, 32>}, {pipeline_mode = #tpu.pipeline_mode<synchronous>, transform_indices = @transform_2, window_bounds = array<i64: 1, 32>}, {pipeline_mode = #tpu.pipeline_mode<synchronous>, transform_indices = @transform_3, window_bounds = array<i64: 48, 32>}]} {
    %c0 = arith.constant 0 : index
    %c0_0 = arith.constant 0 : index
    %0 = vector.load %arg1[%c0, %c0_0] : memref<48x32xf32, #tpu.memory_space<vmem>>, vector<48x32xf32>
    %c0_1 = arith.constant 0 : index
    %c0_2 = arith.constant 0 : index
    %1 = vector.load %arg2[%c0_1, %c0_2] : memref<1x32xf32, #tpu.memory_space<vmem>>, vector<1x32xf32>
    %c0_3 = arith.constant 0 : index
    %c0_4 = arith.constant 0 : index
    %2 = vector.load %arg3[%c0_3, %c0_4] : memref<1x32xf32, #tpu.memory_space<vmem>>, vector<1x32xf32>
    %cst = arith.constant dense<0.000000e+00> : vector<48xf32>
    %3 = vector.multi_reduction <add>, %0, %cst [1] : vector<48x32xf32> to vector<48xf32>
    %4 = vector.shape_cast %3 : vector<48xf32> to vector<48x1xf32>
    %cst_5 = arith.constant 3.200000e+01 : f32
    %5 = vector.broadcast %cst_5 : f32 to vector<48x1xf32>
    %6 = arith.divf %4, %5 : vector<48x1xf32>
    %7 = vector.broadcast %6 : vector<48x1xf32> to vector<48x32xf32>
    %8 = arith.subf %0, %7 : vector<48x32xf32>
    %9 = arith.mulf %8, %8 : vector<48x32xf32>
    %cst_6 = arith.constant dense<0.000000e+00> : vector<48xf32>
    %10 = vector.multi_reduction <add>, %9, %cst_6 [1] : vector<48x32xf32> to vector<48xf32>
    %11 = vector.shape_cast %10 : vector<48xf32> to vector<48x1xf32>
    %cst_7 = arith.constant 3.200000e+01 : f32
    %12 = vector.broadcast %cst_7 : f32 to vector<48x1xf32>
    %13 = arith.divf %11, %12 : vector<48x1xf32>
    %cst_8 = arith.constant 9.99999996E-13 : f32
    %14 = vector.broadcast %cst_8 : f32 to vector<48x1xf32>
    %15 = arith.addf %13, %14 : vector<48x1xf32>
    %16 = math.rsqrt %15 : vector<48x1xf32>
    %17 = vector.broadcast %16 : vector<48x1xf32> to vector<48x32xf32>
    %18 = arith.mulf %8, %17 : vector<48x32xf32>
    %19 = vector.broadcast %1 : vector<1x32xf32> to vector<48x32xf32>
    %20 = arith.mulf %18, %19 : vector<48x32xf32>
    %21 = vector.broadcast %2 : vector<1x32xf32> to vector<48x32xf32>
    %22 = arith.addf %20, %21 : vector<48x32xf32>
    %c0_9 = arith.constant 0 : index
    %c0_10 = arith.constant 0 : index
    %23 = vector.load %arg4[%c0_9, %c0_10] : memref<48x32xf32, #tpu.memory_space<vmem>>, vector<48x32xf32>
    tpu.vector_store %arg4[%c0_9, %c0_10], %22 {strides = array<i32>} : memref<48x32xf32, #tpu.memory_space<vmem>>, vector<48x32xf32>,
    return
  }
  func.func @transform_0(%arg0: i32) -> (i32, i32) {
    %c0_i32 = arith.constant 0 : i32
    %c0_i32_0 = arith.constant 0 : i32
    %c0_i32_1 = arith.constant 0 : i32
    return %c0_i32, %c0_i32_0 : i32, i32
  }
  func.func @transform_1(%arg0: i32) -> (i32, i32) {
    %c0_i32 = arith.constant 0 : i32
    %c0_i32_0 = arith.constant 0 : i32
    %c0_i32_1 = arith.constant 0 : i32
    return %c0_i32, %c0_i32_0 : i32, i32
  }
  func.func @transform_2(%arg0: i32) -> (i32, i32) {
    %c0_i32 = arith.constant 0 : i32
    %c0_i32_0 = arith.constant 0 : i32
    %c0_i32_1 = arith.constant 0 : i32
    return %c0_i32, %c0_i32_0 : i32, i32
  }
  func.func @transform_3(%arg0: i32) -> (i32, i32) {
    %c0_i32 = arith.constant 0 : i32
    %c0_i32_0 = arith.constant 0 : i32
    %c0_i32_1 = arith.constant 0 : i32
    return %c0_i32, %c0_i32_0 : i32, i32
  }
}

module attributes {stable_mosaic.version = 11 : i64} {
  func.func @_head_kernel(%arg0: i32, %arg1: memref<3x2x32xf32, #tpu.memory_space<vmem>>, %arg2: memref<32x32xf32, #tpu.memory_space<vmem>>, %arg3: memref<1x32xf32, #tpu.memory_space<vmem>>, %arg4: memref<32x32xf32, #tpu.memory_space<vmem>>, %arg5: memref<1x1xf32, #tpu.memory_space<vmem>>, %arg6: memref<2x2xf32, #tpu.memory_space<vmem>>) attributes {dimension_semantics = [#tpu.dimension_semantics<arbitrary>], iteration_bounds = array<i64: 1>, scalar_prefetch = 0 : i64, scratch_operands = 0 : i64, tpu.core_type = #tpu.core_type<tc>, window_params = [{pipeline_mode = #tpu.pipeline_mode<synchronous>, transform_indices = @transform_0, window_bounds = array<i64: 3, 2, 32>}, {pipeline_mode = #tpu.pipeline_mode<synchronous>, transform_indices = @transform_1, window_bounds = array<i64: 32, 32>}, {pipeline_mode = #tpu.pipeline_mode<synchronous>, transform_indices = @transform_2, window_bounds = array<i64: 1, 32>}, {pipeline_mode = #tpu.pipeline_mode<synchronous>, transform_indices = @transform_3, window_bounds = array<i64: 32, 32>}, {pipeline_mode = #tpu.pipeline_mode<synchronous>, transform_indices = @transform_4, window_bounds = array<i64: 1, 1>}, {pipeline_mode = #tpu.pipeline_mode<synchronous>, transform_indices = @transform_5, window_bounds = array<i64: 2, 2>}]} {
    %c0 = arith.constant 0 : index
    %c0_0 = arith.constant 0 : index
    %0 = vector.load %arg2[%c0, %c0_0] : memref<32x32xf32, #tpu.memory_space<vmem>>, vector<32x32xf32>
    %c0_1 = arith.constant 0 : index
    %c0_2 = arith.constant 0 : index
    %1 = vector.load %arg3[%c0_1, %c0_2] : memref<1x32xf32, #tpu.memory_space<vmem>>, vector<1x32xf32>
    %c0_3 = arith.constant 0 : index
    %c0_4 = arith.constant 0 : index
    %c0_5 = arith.constant 0 : index
    %2 = vector.load %arg1[%c0_3, %c0_4, %c0_5] : memref<3x2x32xf32, #tpu.memory_space<vmem>>, vector<1x2x32xf32>
    %3 = vector.shape_cast %2 : vector<1x2x32xf32> to vector<2x32xf32>
    %cst = arith.constant dense<0.000000e+00> : vector<2x32xf32>
    %4 = tpu.matmul %3, %0, %cst {dimension_numbers = #tpu.dot_dimension_numbers<[1], [0], [0], [1], [0, 0, 1, 1], [], []>} : vector<2x32xf32>, vector<32x32xf32>, vector<2x32xf32> -> vector<2x32xf32>
    %5 = vector.broadcast %1 : vector<1x32xf32> to vector<2x32xf32>
    %6 = arith.addf %4, %5 : vector<2x32xf32>
    %7 = math.tanh %6 : vector<2x32xf32>
    %c1 = arith.constant 1 : index
    %c0_6 = arith.constant 0 : index
    %c0_7 = arith.constant 0 : index
    %8 = vector.load %arg1[%c1, %c0_6, %c0_7] : memref<3x2x32xf32, #tpu.memory_space<vmem>>, vector<1x2x32xf32>
    %9 = vector.shape_cast %8 : vector<1x2x32xf32> to vector<2x32xf32>
    %cst_8 = arith.constant dense<0.000000e+00> : vector<2x32xf32>
    %10 = tpu.matmul %9, %0, %cst_8 {dimension_numbers = #tpu.dot_dimension_numbers<[1], [0], [0], [1], [0, 0, 1, 1], [], []>} : vector<2x32xf32>, vector<32x32xf32>, vector<2x32xf32> -> vector<2x32xf32>
    %11 = vector.broadcast %1 : vector<1x32xf32> to vector<2x32xf32>
    %12 = arith.addf %10, %11 : vector<2x32xf32>
    %13 = math.tanh %12 : vector<2x32xf32>
    %c2 = arith.constant 2 : index
    %c0_9 = arith.constant 0 : index
    %c0_10 = arith.constant 0 : index
    %14 = vector.load %arg1[%c2, %c0_9, %c0_10] : memref<3x2x32xf32, #tpu.memory_space<vmem>>, vector<1x2x32xf32>
    %15 = vector.shape_cast %14 : vector<1x2x32xf32> to vector<2x32xf32>
    %cst_11 = arith.constant dense<0.000000e+00> : vector<2x32xf32>
    %16 = tpu.matmul %15, %0, %cst_11 {dimension_numbers = #tpu.dot_dimension_numbers<[1], [0], [0], [1], [0, 0, 1, 1], [], []>} : vector<2x32xf32>, vector<32x32xf32>, vector<2x32xf32> -> vector<2x32xf32>
    %17 = vector.broadcast %1 : vector<1x32xf32> to vector<2x32xf32>
    %18 = arith.addf %16, %17 : vector<2x32xf32>
    %19 = math.tanh %18 : vector<2x32xf32>
    %c0_12 = arith.constant 0 : index
    %c0_13 = arith.constant 0 : index
    %20 = vector.load %arg4[%c0_12, %c0_13] : memref<32x32xf32, #tpu.memory_space<vmem>>, vector<32x32xf32>
    %cst_14 = arith.constant dense<0.000000e+00> : vector<2x32xf32>
    %21 = tpu.matmul %7, %20, %cst_14 {dimension_numbers = #tpu.dot_dimension_numbers<[1], [0], [0], [1], [0, 0, 1, 1], [], []>} : vector<2x32xf32>, vector<32x32xf32>, vector<2x32xf32> -> vector<2x32xf32>
    %22 = arith.mulf %21, %13 : vector<2x32xf32>
    %cst_15 = arith.constant dense<0.000000e+00> : vector<2xf32>
    %23 = vector.multi_reduction <add>, %22, %cst_15 [1] : vector<2x32xf32> to vector<2xf32>
    %24 = vector.shape_cast %23 : vector<2xf32> to vector<2x1xf32>
    %25 = arith.mulf %21, %19 : vector<2x32xf32>
    %cst_16 = arith.constant dense<0.000000e+00> : vector<2xf32>
    %26 = vector.multi_reduction <add>, %25, %cst_16 [1] : vector<2x32xf32> to vector<2xf32>
    %27 = vector.shape_cast %26 : vector<2xf32> to vector<2x1xf32>
    %28 = tpu.concatenate %24, %27 in 1 : vector<2x1xf32>, vector<2x1xf32> -> vector<2x2xf32>
    %c0_17 = arith.constant 0 : index
    %c0_18 = arith.constant 0 : index
    %29 = vector.load %arg5[%c0_17, %c0_18] : memref<1x1xf32, #tpu.memory_space<vmem>>, vector<1x1xf32>
    %30 = vector.broadcast %29 : vector<1x1xf32> to vector<2x2xf32>
    %31 = arith.addf %28, %30 : vector<2x2xf32>
    %c0_19 = arith.constant 0 : index
    %c0_20 = arith.constant 0 : index
    %32 = vector.load %arg6[%c0_19, %c0_20] : memref<2x2xf32, #tpu.memory_space<vmem>>, vector<2x2xf32>
    tpu.vector_store %arg6[%c0_19, %c0_20], %31 {strides = array<i32>} : memref<2x2xf32, #tpu.memory_space<vmem>>, vector<2x2xf32>,
    return
  }
  func.func @transform_0(%arg0: i32) -> (i32, i32, i32) {
    %c0_i32 = arith.constant 0 : i32
    %c0_i32_0 = arith.constant 0 : i32
    %c0_i32_1 = arith.constant 0 : i32
    %c0_i32_2 = arith.constant 0 : i32
    return %c0_i32, %c0_i32_0, %c0_i32_1 : i32, i32, i32
  }
  func.func @transform_1(%arg0: i32) -> (i32, i32) {
    %c0_i32 = arith.constant 0 : i32
    %c0_i32_0 = arith.constant 0 : i32
    %c0_i32_1 = arith.constant 0 : i32
    return %c0_i32, %c0_i32_0 : i32, i32
  }
  func.func @transform_2(%arg0: i32) -> (i32, i32) {
    %c0_i32 = arith.constant 0 : i32
    %c0_i32_0 = arith.constant 0 : i32
    %c0_i32_1 = arith.constant 0 : i32
    return %c0_i32, %c0_i32_0 : i32, i32
  }
  func.func @transform_3(%arg0: i32) -> (i32, i32) {
    %c0_i32 = arith.constant 0 : i32
    %c0_i32_0 = arith.constant 0 : i32
    %c0_i32_1 = arith.constant 0 : i32
    return %c0_i32, %c0_i32_0 : i32, i32
  }
  func.func @transform_4(%arg0: i32) -> (i32, i32) {
    %c0_i32 = arith.constant 0 : i32
    %c0_i32_0 = arith.constant 0 : i32
    %c0_i32_1 = arith.constant 0 : i32
    return %c0_i32, %c0_i32_0 : i32, i32
  }
  func.func @transform_5(%arg0: i32) -> (i32, i32) {
    %c0_i32 = arith.constant 0 : i32
    %c0_i32_0 = arith.constant 0 : i32
    %c0_i32_1 = arith.constant 0 : i32
    return %c0_i32, %c0_i32_0 : i32, i32
  }
}

module attributes {stable_mosaic.version = 11 : i64} {
  func.func @_encoder_layer_kernel(%arg0: i32, %arg1: memref<48x32xf32, #tpu.memory_space<vmem>>, %arg2: memref<32x96xf32, #tpu.memory_space<vmem>>, %arg3: memref<1x96xf32, #tpu.memory_space<vmem>>, %arg4: memref<32x32xf32, #tpu.memory_space<vmem>>, %arg5: memref<1x32xf32, #tpu.memory_space<vmem>>, %arg6: memref<1x32xf32, #tpu.memory_space<vmem>>, %arg7: memref<1x32xf32, #tpu.memory_space<vmem>>, %arg8: memref<32x64xf32, #tpu.memory_space<vmem>>, %arg9: memref<1x64xf32, #tpu.memory_space<vmem>>, %arg10: memref<64x32xf32, #tpu.memory_space<vmem>>, %arg11: memref<1x32xf32, #tpu.memory_space<vmem>>, %arg12: memref<1x32xf32, #tpu.memory_space<vmem>>, %arg13: memref<1x32xf32, #tpu.memory_space<vmem>>, %arg14: memref<48x32xf32, #tpu.memory_space<vmem>>) attributes {dimension_semantics = [#tpu.dimension_semantics<arbitrary>], iteration_bounds = array<i64: 1>, scalar_prefetch = 0 : i64, scratch_operands = 0 : i64, tpu.core_type = #tpu.core_type<tc>, window_params = [{pipeline_mode = #tpu.pipeline_mode<synchronous>, transform_indices = @transform_0, window_bounds = array<i64: 48, 32>}, {pipeline_mode = #tpu.pipeline_mode<synchronous>, transform_indices = @transform_1, window_bounds = array<i64: 32, 96>}, {pipeline_mode = #tpu.pipeline_mode<synchronous>, transform_indices = @transform_2, window_bounds = array<i64: 1, 96>}, {pipeline_mode = #tpu.pipeline_mode<synchronous>, transform_indices = @transform_3, window_bounds = array<i64: 32, 32>}, {pipeline_mode = #tpu.pipeline_mode<synchronous>, transform_indices = @transform_4, window_bounds = array<i64: 1, 32>}, {pipeline_mode = #tpu.pipeline_mode<synchronous>, transform_indices = @transform_5, window_bounds = array<i64: 1, 32>}, {pipeline_mode = #tpu.pipeline_mode<synchronous>, transform_indices = @transform_6, window_bounds = array<i64: 1, 32>}, {pipeline_mode = #tpu.pipeline_mode<synchronous>, transform_indices = @transform_7, window_bounds = array<i64: 32, 64>}, {pipeline_mode = #tpu.pipeline_mode<synchronous>, transform_indices = @transform_8, window_bounds = array<i64: 1, 64>}, {pipeline_mode = #tpu.pipeline_mode<synchronous>, transform_indices = @transform_9, window_bounds = array<i64: 64, 32>}, {pipeline_mode = #tpu.pipeline_mode<synchronous>, transform_indices = @transform_10, window_bounds = array<i64: 1, 32>}, {pipeline_mode = #tpu.pipeline_mode<synchronous>, transform_indices = @transform_11, window_bounds = array<i64: 1, 32>}, {pipeline_mode = #tpu.pipeline_mode<synchronous>, transform_indices = @transform_12, window_bounds = array<i64: 1, 32>}, {pipeline_mode = #tpu.pipeline_mode<synchronous>, transform_indices = @transform_13, window_bounds = array<i64: 48, 32>}]} {
    %c0 = arith.constant 0 : index
    %c0_0 = arith.constant 0 : index
    %0 = vector.load %arg1[%c0, %c0_0] : memref<48x32xf32, #tpu.memory_space<vmem>>, vector<48x32xf32>
    %c0_1 = arith.constant 0 : index
    %c0_2 = arith.constant 0 : index
    %1 = vector.load %arg2[%c0_1, %c0_2] : memref<32x96xf32, #tpu.memory_space<vmem>>, vector<32x96xf32>
    %cst = arith.constant dense<0.000000e+00> : vector<48x96xf32>
    %2 = tpu.matmul %0, %1, %cst {dimension_numbers = #tpu.dot_dimension_numbers<[1], [0], [0], [1], [0, 0, 1, 1], [], []>} : vector<48x32xf32>, vector<32x96xf32>, vector<48x96xf32> -> vector<48x96xf32>
    %c0_3 = arith.constant 0 : index
    %c0_4 = arith.constant 0 : index
    %3 = vector.load %arg3[%c0_3, %c0_4] : memref<1x96xf32, #tpu.memory_space<vmem>>, vector<1x96xf32>
    %4 = vector.broadcast %3 : vector<1x96xf32> to vector<48x96xf32>
    %5 = arith.addf %2, %4 : vector<48x96xf32>
    %6 = vector.extract_strided_slice %5 {offsets = [0, 0], sizes = [48, 8], strides = [1, 1]} : vector<48x96xf32> to vector<48x8xf32>
    %7 = vector.shape_cast %6 : vector<48x8xf32> to vector<6x8x8xf32>
    %8 = vector.extract_strided_slice %5 {offsets = [0, 32], sizes = [48, 8], strides = [1, 1]} : vector<48x96xf32> to vector<48x8xf32>
    %9 = vector.shape_cast %8 : vector<48x8xf32> to vector<6x8x8xf32>
    %10 = vector.extract_strided_slice %5 {offsets = [0, 64], sizes = [48, 8], strides = [1, 1]} : vector<48x96xf32> to vector<48x8xf32>
    %11 = vector.shape_cast %10 : vector<48x8xf32> to vector<6x8x8xf32>
    "tpu.trace_start"() <{level = 10 : i32, message = "bqd,bkd->bqk"}> : () -> ()
    %cst_5 = arith.constant dense<0.000000e+00> : vector<6x8x8xf32>
    %12 = tpu.matmul %7, %9, %cst_5 {dimension_numbers = #tpu.dot_dimension_numbers<[2], [2], [1], [1], [0, 0, 0, 1, 1, 1], [0], [0]>} : vector<6x8x8xf32>, vector<6x8x8xf32>, vector<6x8x8xf32> -> vector<6x8x8xf32>
    "tpu.trace_stop"() : () -> ()
    %cst_6 = arith.constant 0.353553385 : f32
    %13 = vector.broadcast %cst_6 : f32 to vector<6x8x8xf32>
    %14 = arith.mulf %12, %13 : vector<6x8x8xf32>
    %cst_7 = arith.constant dense<0xFF800000> : vector<6x8xf32>
    %15 = vector.multi_reduction <maximumf>, %14, %cst_7 [2] : vector<6x8x8xf32> to vector<6x8xf32>
    %16 = vector.shape_cast %15 : vector<6x8xf32> to vector<6x8x1xf32>
    %17 = vector.broadcast %16 : vector<6x8x1xf32> to vector<6x8x8xf32>
    %18 = arith.subf %14, %17 : vector<6x8x8xf32>
    %19 = math.exp %18 : vector<6x8x8xf32>
    %cst_8 = arith.constant dense<0.000000e+00> : vector<6x8xf32>
    %20 = vector.multi_reduction <add>, %19, %cst_8 [2] : vector<6x8x8xf32> to vector<6x8xf32>
    %21 = vector.shape_cast %20 : vector<6x8xf32> to vector<6x8x1xf32>
    %22 = tpu.reciprocal %21 {approx = true} : vector<6x8x1xf32> -> vector<6x8x1xf32>
    %23 = vector.broadcast %22 : vector<6x8x1xf32> to vector<6x8x8xf32>
    %24 = arith.mulf %19, %23 : vector<6x8x8xf32>
    "tpu.trace_start"() <{level = 10 : i32, message = "bqk,bkd->bqd"}> : () -> ()
    %cst_9 = arith.constant dense<0.000000e+00> : vector<6x8x8xf32>
    %25 = tpu.matmul %24, %11, %cst_9 {dimension_numbers = #tpu.dot_dimension_numbers<[2], [1], [1], [2], [0, 0, 0, 1, 1, 2], [0], [0]>} : vector<6x8x8xf32>, vector<6x8x8xf32>, vector<6x8x8xf32> -> vector<6x8x8xf32>
    "tpu.trace_stop"() : () -> ()
    %26 = vector.extract_strided_slice %5 {offsets = [0, 8], sizes = [48, 8], strides = [1, 1]} : vector<48x96xf32> to vector<48x8xf32>
    %27 = vector.shape_cast %26 : vector<48x8xf32> to vector<6x8x8xf32>
    %28 = vector.extract_strided_slice %5 {offsets = [0, 40], sizes = [48, 8], strides = [1, 1]} : vector<48x96xf32> to vector<48x8xf32>
    %29 = vector.shape_cast %28 : vector<48x8xf32> to vector<6x8x8xf32>
    %30 = vector.extract_strided_slice %5 {offsets = [0, 72], sizes = [48, 8], strides = [1, 1]} : vector<48x96xf32> to vector<48x8xf32>
    %31 = vector.shape_cast %30 : vector<48x8xf32> to vector<6x8x8xf32>
    "tpu.trace_start"() <{level = 10 : i32, message = "bqd,bkd->bqk"}> : () -> ()
    %cst_10 = arith.constant dense<0.000000e+00> : vector<6x8x8xf32>
    %32 = tpu.matmul %27, %29, %cst_10 {dimension_numbers = #tpu.dot_dimension_numbers<[2], [2], [1], [1], [0, 0, 0, 1, 1, 1], [0], [0]>} : vector<6x8x8xf32>, vector<6x8x8xf32>, vector<6x8x8xf32> -> vector<6x8x8xf32>
    "tpu.trace_stop"() : () -> ()
    %cst_11 = arith.constant 0.353553385 : f32
    %33 = vector.broadcast %cst_11 : f32 to vector<6x8x8xf32>
    %34 = arith.mulf %32, %33 : vector<6x8x8xf32>
    %cst_12 = arith.constant dense<0xFF800000> : vector<6x8xf32>
    %35 = vector.multi_reduction <maximumf>, %34, %cst_12 [2] : vector<6x8x8xf32> to vector<6x8xf32>
    %36 = vector.shape_cast %35 : vector<6x8xf32> to vector<6x8x1xf32>
    %37 = vector.broadcast %36 : vector<6x8x1xf32> to vector<6x8x8xf32>
    %38 = arith.subf %34, %37 : vector<6x8x8xf32>
    %39 = math.exp %38 : vector<6x8x8xf32>
    %cst_13 = arith.constant dense<0.000000e+00> : vector<6x8xf32>
    %40 = vector.multi_reduction <add>, %39, %cst_13 [2] : vector<6x8x8xf32> to vector<6x8xf32>
    %41 = vector.shape_cast %40 : vector<6x8xf32> to vector<6x8x1xf32>
    %42 = tpu.reciprocal %41 {approx = true} : vector<6x8x1xf32> -> vector<6x8x1xf32>
    %43 = vector.broadcast %42 : vector<6x8x1xf32> to vector<6x8x8xf32>
    %44 = arith.mulf %39, %43 : vector<6x8x8xf32>
    "tpu.trace_start"() <{level = 10 : i32, message = "bqk,bkd->bqd"}> : () -> ()
    %cst_14 = arith.constant dense<0.000000e+00> : vector<6x8x8xf32>
    %45 = tpu.matmul %44, %31, %cst_14 {dimension_numbers = #tpu.dot_dimension_numbers<[2], [1], [1], [2], [0, 0, 0, 1, 1, 2], [0], [0]>} : vector<6x8x8xf32>, vector<6x8x8xf32>, vector<6x8x8xf32> -> vector<6x8x8xf32>
    "tpu.trace_stop"() : () -> ()
    %46 = vector.extract_strided_slice %5 {offsets = [0, 16], sizes = [48, 8], strides = [1, 1]} : vector<48x96xf32> to vector<48x8xf32>
    %47 = vector.shape_cast %46 : vector<48x8xf32> to vector<6x8x8xf32>
    %48 = vector.extract_strided_slice %5 {offsets = [0, 48], sizes = [48, 8], strides = [1, 1]} : vector<48x96xf32> to vector<48x8xf32>
    %49 = vector.shape_cast %48 : vector<48x8xf32> to vector<6x8x8xf32>
    %50 = vector.extract_strided_slice %5 {offsets = [0, 80], sizes = [48, 8], strides = [1, 1]} : vector<48x96xf32> to vector<48x8xf32>
    %51 = vector.shape_cast %50 : vector<48x8xf32> to vector<6x8x8xf32>
    "tpu.trace_start"() <{level = 10 : i32, message = "bqd,bkd->bqk"}> : () -> ()
    %cst_15 = arith.constant dense<0.000000e+00> : vector<6x8x8xf32>
    %52 = tpu.matmul %47, %49, %cst_15 {dimension_numbers = #tpu.dot_dimension_numbers<[2], [2], [1], [1], [0, 0, 0, 1, 1, 1], [0], [0]>} : vector<6x8x8xf32>, vector<6x8x8xf32>, vector<6x8x8xf32> -> vector<6x8x8xf32>
    "tpu.trace_stop"() : () -> ()
    %cst_16 = arith.constant 0.353553385 : f32
    %53 = vector.broadcast %cst_16 : f32 to vector<6x8x8xf32>
    %54 = arith.mulf %52, %53 : vector<6x8x8xf32>
    %cst_17 = arith.constant dense<0xFF800000> : vector<6x8xf32>
    %55 = vector.multi_reduction <maximumf>, %54, %cst_17 [2] : vector<6x8x8xf32> to vector<6x8xf32>
    %56 = vector.shape_cast %55 : vector<6x8xf32> to vector<6x8x1xf32>
    %57 = vector.broadcast %56 : vector<6x8x1xf32> to vector<6x8x8xf32>
    %58 = arith.subf %54, %57 : vector<6x8x8xf32>
    %59 = math.exp %58 : vector<6x8x8xf32>
    %cst_18 = arith.constant dense<0.000000e+00> : vector<6x8xf32>
    %60 = vector.multi_reduction <add>, %59, %cst_18 [2] : vector<6x8x8xf32> to vector<6x8xf32>
    %61 = vector.shape_cast %60 : vector<6x8xf32> to vector<6x8x1xf32>
    %62 = tpu.reciprocal %61 {approx = true} : vector<6x8x1xf32> -> vector<6x8x1xf32>
    %63 = vector.broadcast %62 : vector<6x8x1xf32> to vector<6x8x8xf32>
    %64 = arith.mulf %59, %63 : vector<6x8x8xf32>
    "tpu.trace_start"() <{level = 10 : i32, message = "bqk,bkd->bqd"}> : () -> ()
    %cst_19 = arith.constant dense<0.000000e+00> : vector<6x8x8xf32>
    %65 = tpu.matmul %64, %51, %cst_19 {dimension_numbers = #tpu.dot_dimension_numbers<[2], [1], [1], [2], [0, 0, 0, 1, 1, 2], [0], [0]>} : vector<6x8x8xf32>, vector<6x8x8xf32>, vector<6x8x8xf32> -> vector<6x8x8xf32>
    "tpu.trace_stop"() : () -> ()
    %66 = vector.extract_strided_slice %5 {offsets = [0, 24], sizes = [48, 8], strides = [1, 1]} : vector<48x96xf32> to vector<48x8xf32>
    %67 = vector.shape_cast %66 : vector<48x8xf32> to vector<6x8x8xf32>
    %68 = vector.extract_strided_slice %5 {offsets = [0, 56], sizes = [48, 8], strides = [1, 1]} : vector<48x96xf32> to vector<48x8xf32>
    %69 = vector.shape_cast %68 : vector<48x8xf32> to vector<6x8x8xf32>
    %70 = vector.extract_strided_slice %5 {offsets = [0, 88], sizes = [48, 8], strides = [1, 1]} : vector<48x96xf32> to vector<48x8xf32>
    %71 = vector.shape_cast %70 : vector<48x8xf32> to vector<6x8x8xf32>
    "tpu.trace_start"() <{level = 10 : i32, message = "bqd,bkd->bqk"}> : () -> ()
    %cst_20 = arith.constant dense<0.000000e+00> : vector<6x8x8xf32>
    %72 = tpu.matmul %67, %69, %cst_20 {dimension_numbers = #tpu.dot_dimension_numbers<[2], [2], [1], [1], [0, 0, 0, 1, 1, 1], [0], [0]>} : vector<6x8x8xf32>, vector<6x8x8xf32>, vector<6x8x8xf32> -> vector<6x8x8xf32>
    "tpu.trace_stop"() : () -> ()
    %cst_21 = arith.constant 0.353553385 : f32
    %73 = vector.broadcast %cst_21 : f32 to vector<6x8x8xf32>
    %74 = arith.mulf %72, %73 : vector<6x8x8xf32>
    %cst_22 = arith.constant dense<0xFF800000> : vector<6x8xf32>
    %75 = vector.multi_reduction <maximumf>, %74, %cst_22 [2] : vector<6x8x8xf32> to vector<6x8xf32>
    %76 = vector.shape_cast %75 : vector<6x8xf32> to vector<6x8x1xf32>
    %77 = vector.broadcast %76 : vector<6x8x1xf32> to vector<6x8x8xf32>
    %78 = arith.subf %74, %77 : vector<6x8x8xf32>
    %79 = math.exp %78 : vector<6x8x8xf32>
    %cst_23 = arith.constant dense<0.000000e+00> : vector<6x8xf32>
    %80 = vector.multi_reduction <add>, %79, %cst_23 [2] : vector<6x8x8xf32> to vector<6x8xf32>
    %81 = vector.shape_cast %80 : vector<6x8xf32> to vector<6x8x1xf32>
    %82 = tpu.reciprocal %81 {approx = true} : vector<6x8x1xf32> -> vector<6x8x1xf32>
    %83 = vector.broadcast %82 : vector<6x8x1xf32> to vector<6x8x8xf32>
    %84 = arith.mulf %79, %83 : vector<6x8x8xf32>
    "tpu.trace_start"() <{level = 10 : i32, message = "bqk,bkd->bqd"}> : () -> ()
    %cst_24 = arith.constant dense<0.000000e+00> : vector<6x8x8xf32>
    %85 = tpu.matmul %84, %71, %cst_24 {dimension_numbers = #tpu.dot_dimension_numbers<[2], [1], [1], [2], [0, 0, 0, 1, 1, 2], [0], [0]>} : vector<6x8x8xf32>, vector<6x8x8xf32>, vector<6x8x8xf32> -> vector<6x8x8xf32>
    "tpu.trace_stop"() : () -> ()
    %86 = tpu.concatenate %25, %45, %65, %85 in 2 : vector<6x8x8xf32>, vector<6x8x8xf32>, vector<6x8x8xf32>, vector<6x8x8xf32> -> vector<6x8x32xf32>
    %87 = vector.shape_cast %86 : vector<6x8x32xf32> to vector<48x32xf32>
    %c0_25 = arith.constant 0 : index
    %c0_26 = arith.constant 0 : index
    %88 = vector.load %arg4[%c0_25, %c0_26] : memref<32x32xf32, #tpu.memory_space<vmem>>, vector<32x32xf32>
    %cst_27 = arith.constant dense<0.000000e+00> : vector<48x32xf32>
    %89 = tpu.matmul %87, %88, %cst_27 {dimension_numbers = #tpu.dot_dimension_numbers<[1], [0], [0], [1], [0, 0, 1, 1], [], []>} : vector<48x32xf32>, vector<32x32xf32>, vector<48x32xf32> -> vector<48x32xf32>
    %c0_28 = arith.constant 0 : index
    %c0_29 = arith.constant 0 : index
    %90 = vector.load %arg5[%c0_28, %c0_29] : memref<1x32xf32, #tpu.memory_space<vmem>>, vector<1x32xf32>
    %91 = vector.broadcast %90 : vector<1x32xf32> to vector<48x32xf32>
    %92 = arith.addf %89, %91 : vector<48x32xf32>
    %93 = arith.addf %92, %0 : vector<48x32xf32>
    %c0_30 = arith.constant 0 : index
    %c0_31 = arith.constant 0 : index
    %94 = vector.load %arg6[%c0_30, %c0_31] : memref<1x32xf32, #tpu.memory_space<vmem>>, vector<1x32xf32>
    %c0_32 = arith.constant 0 : index
    %c0_33 = arith.constant 0 : index
    %95 = vector.load %arg7[%c0_32, %c0_33] : memref<1x32xf32, #tpu.memory_space<vmem>>, vector<1x32xf32>
    %cst_34 = arith.constant dense<0.000000e+00> : vector<48xf32>
    %96 = vector.multi_reduction <add>, %93, %cst_34 [1] : vector<48x32xf32> to vector<48xf32>
    %97 = vector.shape_cast %96 : vector<48xf32> to vector<48x1xf32>
    %cst_35 = arith.constant 3.200000e+01 : f32
    %98 = vector.broadcast %cst_35 : f32 to vector<48x1xf32>
    %99 = arith.divf %97, %98 : vector<48x1xf32>
    %100 = vector.broadcast %99 : vector<48x1xf32> to vector<48x32xf32>
    %101 = arith.subf %93, %100 : vector<48x32xf32>
    %102 = arith.mulf %101, %101 : vector<48x32xf32>
    %cst_36 = arith.constant dense<0.000000e+00> : vector<48xf32>
    %103 = vector.multi_reduction <add>, %102, %cst_36 [1] : vector<48x32xf32> to vector<48xf32>
    %104 = vector.shape_cast %103 : vector<48xf32> to vector<48x1xf32>
    %cst_37 = arith.constant 3.200000e+01 : f32
    %105 = vector.broadcast %cst_37 : f32 to vector<48x1xf32>
    %106 = arith.divf %104, %105 : vector<48x1xf32>
    %cst_38 = arith.constant 9.99999996E-13 : f32
    %107 = vector.broadcast %cst_38 : f32 to vector<48x1xf32>
    %108 = arith.addf %106, %107 : vector<48x1xf32>
    %109 = math.rsqrt %108 : vector<48x1xf32>
    %110 = vector.broadcast %109 : vector<48x1xf32> to vector<48x32xf32>
    %111 = arith.mulf %101, %110 : vector<48x32xf32>
    %112 = vector.broadcast %94 : vector<1x32xf32> to vector<48x32xf32>
    %113 = arith.mulf %111, %112 : vector<48x32xf32>
    %114 = vector.broadcast %95 : vector<1x32xf32> to vector<48x32xf32>
    %115 = arith.addf %113, %114 : vector<48x32xf32>
    %c0_39 = arith.constant 0 : index
    %c0_40 = arith.constant 0 : index
    %116 = vector.load %arg8[%c0_39, %c0_40] : memref<32x64xf32, #tpu.memory_space<vmem>>, vector<32x64xf32>
    %cst_41 = arith.constant dense<0.000000e+00> : vector<48x64xf32>
    %117 = tpu.matmul %115, %116, %cst_41 {dimension_numbers = #tpu.dot_dimension_numbers<[1], [0], [0], [1], [0, 0, 1, 1], [], []>} : vector<48x32xf32>, vector<32x64xf32>, vector<48x64xf32> -> vector<48x64xf32>
    %c0_42 = arith.constant 0 : index
    %c0_43 = arith.constant 0 : index
    %118 = vector.load %arg9[%c0_42, %c0_43] : memref<1x64xf32, #tpu.memory_space<vmem>>, vector<1x64xf32>
    %119 = vector.broadcast %118 : vector<1x64xf32> to vector<48x64xf32>
    %120 = arith.addf %117, %119 : vector<48x64xf32>
    %121 = arith.mulf %120, %120 : vector<48x64xf32>
    %122 = arith.mulf %120, %121 : vector<48x64xf32>
    %cst_44 = arith.constant 4.471500e-02 : f32
    %123 = vector.broadcast %cst_44 : f32 to vector<48x64xf32>
    %124 = arith.mulf %123, %122 : vector<48x64xf32>
    %125 = arith.addf %120, %124 : vector<48x64xf32>
    %cst_45 = arith.constant 0.797884583 : f32
    %126 = vector.broadcast %cst_45 : f32 to vector<48x64xf32>
    %127 = arith.mulf %126, %125 : vector<48x64xf32>
    %128 = math.tanh %127 : vector<48x64xf32>
    %cst_46 = arith.constant 1.000000e+00 : f32
    %129 = vector.broadcast %cst_46 : f32 to vector<48x64xf32>
    %130 = arith.addf %129, %128 : vector<48x64xf32>
    %cst_47 = arith.constant 5.000000e-01 : f32
    %131 = vector.broadcast %cst_47 : f32 to vector<48x64xf32>
    %132 = arith.mulf %131, %130 : vector<48x64xf32>
    %133 = arith.mulf %120, %132 : vector<48x64xf32>
    %c0_48 = arith.constant 0 : index
    %c0_49 = arith.constant 0 : index
    %134 = vector.load %arg10[%c0_48, %c0_49] : memref<64x32xf32, #tpu.memory_space<vmem>>, vector<64x32xf32>
    %cst_50 = arith.constant dense<0.000000e+00> : vector<48x32xf32>
    %135 = tpu.matmul %133, %134, %cst_50 {dimension_numbers = #tpu.dot_dimension_numbers<[1], [0], [0], [1], [0, 0, 1, 1], [], []>} : vector<48x64xf32>, vector<64x32xf32>, vector<48x32xf32> -> vector<48x32xf32>
    %c0_51 = arith.constant 0 : index
    %c0_52 = arith.constant 0 : index
    %136 = vector.load %arg11[%c0_51, %c0_52] : memref<1x32xf32, #tpu.memory_space<vmem>>, vector<1x32xf32>
    %137 = vector.broadcast %136 : vector<1x32xf32> to vector<48x32xf32>
    %138 = arith.addf %135, %137 : vector<48x32xf32>
    %139 = arith.addf %138, %115 : vector<48x32xf32>
    %c0_53 = arith.constant 0 : index
    %c0_54 = arith.constant 0 : index
    %140 = vector.load %arg12[%c0_53, %c0_54] : memref<1x32xf32, #tpu.memory_space<vmem>>, vector<1x32xf32>
    %c0_55 = arith.constant 0 : index
    %c0_56 = arith.constant 0 : index
    %141 = vector.load %arg13[%c0_55, %c0_56] : memref<1x32xf32, #tpu.memory_space<vmem>>, vector<1x32xf32>
    %cst_57 = arith.constant dense<0.000000e+00> : vector<48xf32>
    %142 = vector.multi_reduction <add>, %139, %cst_57 [1] : vector<48x32xf32> to vector<48xf32>
    %143 = vector.shape_cast %142 : vector<48xf32> to vector<48x1xf32>
    %cst_58 = arith.constant 3.200000e+01 : f32
    %144 = vector.broadcast %cst_58 : f32 to vector<48x1xf32>
    %145 = arith.divf %143, %144 : vector<48x1xf32>
    %146 = vector.broadcast %145 : vector<48x1xf32> to vector<48x32xf32>
    %147 = arith.subf %139, %146 : vector<48x32xf32>
    %148 = arith.mulf %147, %147 : vector<48x32xf32>
    %cst_59 = arith.constant dense<0.000000e+00> : vector<48xf32>
    %149 = vector.multi_reduction <add>, %148, %cst_59 [1] : vector<48x32xf32> to vector<48xf32>
    %150 = vector.shape_cast %149 : vector<48xf32> to vector<48x1xf32>
    %cst_60 = arith.constant 3.200000e+01 : f32
    %151 = vector.broadcast %cst_60 : f32 to vector<48x1xf32>
    %152 = arith.divf %150, %151 : vector<48x1xf32>
    %cst_61 = arith.constant 9.99999996E-13 : f32
    %153 = vector.broadcast %cst_61 : f32 to vector<48x1xf32>
    %154 = arith.addf %152, %153 : vector<48x1xf32>
    %155 = math.rsqrt %154 : vector<48x1xf32>
    %156 = vector.broadcast %155 : vector<48x1xf32> to vector<48x32xf32>
    %157 = arith.mulf %147, %156 : vector<48x32xf32>
    %158 = vector.broadcast %140 : vector<1x32xf32> to vector<48x32xf32>
    %159 = arith.mulf %157, %158 : vector<48x32xf32>
    %160 = vector.broadcast %141 : vector<1x32xf32> to vector<48x32xf32>
    %161 = arith.addf %159, %160 : vector<48x32xf32>
    %c0_62 = arith.constant 0 : index
    %c0_63 = arith.constant 0 : index
    %162 = vector.load %arg14[%c0_62, %c0_63] : memref<48x32xf32, #tpu.memory_space<vmem>>, vector<48x32xf32>
    tpu.vector_store %arg14[%c0_62, %c0_63], %161 {strides = array<i32>} : memref<48x32xf32, #tpu.memory_space<vmem>>, vector<48x32xf32>,
    return
  }
  func.func @transform_0(%arg0: i32) -> (i32, i32) {
    %c0_i32 = arith.constant 0 : i32
    %c0_i32_0 = arith.constant 0 : i32
    %c0_i32_1 = arith.constant 0 : i32
    return %c0_i32, %c0_i32_0 : i32, i32
  }
  func.func @transform_1(%arg0: i32) -> (i32, i32) {
    %c0_i32 = arith.constant 0 : i32
    %c0_i32_0 = arith.constant 0 : i32
    %c0_i32_1 = arith.constant 0 : i32
    return %c0_i32, %c0_i32_0 : i32, i32
  }
  func.func @transform_2(%arg0: i32) -> (i32, i32) {
    %c0_i32 = arith.constant 0 : i32
    %c0_i32_0 = arith.constant 0 : i32
    %c0_i32_1 = arith.constant 0 : i32
    return %c0_i32, %c0_i32_0 : i32, i32
  }
  func.func @transform_3(%arg0: i32) -> (i32, i32) {
    %c0_i32 = arith.constant 0 : i32
    %c0_i32_0 = arith.constant 0 : i32
    %c0_i32_1 = arith.constant 0 : i32
    return %c0_i32, %c0_i32_0 : i32, i32
  }
  func.func @transform_4(%arg0: i32) -> (i32, i32) {
    %c0_i32 = arith.constant 0 : i32
    %c0_i32_0 = arith.constant 0 : i32
    %c0_i32_1 = arith.constant 0 : i32
    return %c0_i32, %c0_i32_0 : i32, i32
  }
  func.func @transform_5(%arg0: i32) -> (i32, i32) {
    %c0_i32 = arith.constant 0 : i32
    %c0_i32_0 = arith.constant 0 : i32
    %c0_i32_1 = arith.constant 0 : i32
    return %c0_i32, %c0_i32_0 : i32, i32
  }
  func.func @transform_6(%arg0: i32) -> (i32, i32) {
    %c0_i32 = arith.constant 0 : i32
    %c0_i32_0 = arith.constant 0 : i32
    %c0_i32_1 = arith.constant 0 : i32
    return %c0_i32, %c0_i32_0 : i32, i32
  }
  func.func @transform_7(%arg0: i32) -> (i32, i32) {
    %c0_i32 = arith.constant 0 : i32
    %c0_i32_0 = arith.constant 0 : i32
    %c0_i32_1 = arith.constant 0 : i32
    return %c0_i32, %c0_i32_0 : i32, i32
  }
  func.func @transform_8(%arg0: i32) -> (i32, i32) {
    %c0_i32 = arith.constant 0 : i32
    %c0_i32_0 = arith.constant 0 : i32
    %c0_i32_1 = arith.constant 0 : i32
    return %c0_i32, %c0_i32_0 : i32, i32
  }
  func.func @transform_9(%arg0: i32) -> (i32, i32) {
    %c0_i32 = arith.constant 0 : i32
    %c0_i32_0 = arith.constant 0 : i32
    %c0_i32_1 = arith.constant 0 : i32
    return %c0_i32, %c0_i32_0 : i32, i32
  }
  func.func @transform_10(%arg0: i32) -> (i32, i32) {
    %c0_i32 = arith.constant 0 : i32
    %c0_i32_0 = arith.constant 0 : i32
    %c0_i32_1 = arith.constant 0 : i32
    return %c0_i32, %c0_i32_0 : i32, i32
  }
  func.func @transform_11(%arg0: i32) -> (i32, i32) {
    %c0_i32 = arith.constant 0 : i32
    %c0_i32_0 = arith.constant 0 : i32
    %c0_i32_1 = arith.constant 0 : i32
    return %c0_i32, %c0_i32_0 : i32, i32
  }
  func.func @transform_12(%arg0: i32) -> (i32, i32) {
    %c0_i32 = arith.constant 0 : i32
    %c0_i32_0 = arith.constant 0 : i32
    %c0_i32_1 = arith.constant 0 : i32
    return %c0_i32, %c0_i32_0 : i32, i32
  }
  func.func @transform_13(%arg0: i32) -> (i32, i32) {
    %c0_i32 = arith.constant 0 : i32
    %c0_i32_0 = arith.constant 0 : i32
    %c0_i32_1 = arith.constant 0 : i32
    return %c0_i32, %c0_i32_0 : i32, i32
  }
}

</mosaic_0001>

<bundles_post_ra>
// kernel: model_forward.4
= control target key start
LH: loop header
LB: loop body
LE: loop exit
PB: predicated region body
PF: predicated region fallthrough
CT: control target
= control target key end

     0   :  { %vm22_vm0 = vcmask 261120   ;;  %s245_s0 = inlined_call_operand.vmem [shape: f32[48,32], index: 0, kind: input, shape index: {}]   ;;  %s246_s1 = inlined_call_operand.vmem [shape: f32[1,32], index: 1, kind: input, shape index: {}]   ;;  %s247_s2 = inlined_call_operand.vmem [shape: f32[1,32], index: 2, kind: input, shape index: {}]   ;;  %s248_s3 = inlined_call_operand.vmem [shape: f32[48,32], index: 3, kind: output, shape index: {}]  }
   0x1   :  { %v14_v0 = vld [vmem:[%s245_s0] sm:$0xff]  ;;  %v16_v1 = vld [vmem:[%s245_s0 + $0x10] sm:$0xff]  ;;  %v15_v2 = vld [vmem:[%s245_s0 + $0x8] sm:$0xff] }
   0x2   :  { %v23_v3 = vsel %vm22_vm0, %v14_v0, 0.0  ;;  %v29_v4 = vsel %vm22_vm0, %v16_v1, 0.0  ;;  %v17_v5 = vld [vmem:[%s245_s0 + $0x18] sm:$0xff]  ;;  %v26_v6 = vsel %vm22_vm0, %v15_v2, 0.0  ;;  %v18_v8 = vld [vmem:[%s245_s0 + $0x20] sm:$0xff]  ;;  %v19_v9 = vld [vmem:[%s245_s0 + $0x28] sm:$0xff] }
   0x3   :  { %24 = vadd.xlane.f32.xlu0 %v23_v3  ;;  %30 = vadd.xlane.f32.xlu1 %v29_v4  ;;  %v32_v7 = vsel %vm22_vm0, %v17_v5, 0.0  ;;  %v35_v10 = vsel %vm22_vm0, %v18_v8, 0.0  ;;  %v38_v11 = vsel %vm22_vm0, %v19_v9, 0.0  ;;  %v136_v61 = vld [vmem:[%s246_s1] ss:$0 sm:$0xff] }
   0x4   :  { %v137_v63 = vld [vmem:[%s247_s2] ss:$0 sm:$0xff] }
   0x7   :  { %27 = vadd.xlane.f32.xlu0 %v26_v6  ;;  %33 = vadd.xlane.f32.xlu1 %v32_v7 }
   0xb   :  { %36 = vadd.xlane.f32.xlu0 %v35_v10  ;;  %39 = vadd.xlane.f32.xlu1 %v38_v11 }
  0x8c   :  { %v25_v12 = vpop.xlane.xlu0 %24  ;;  %v31_v13 = vpop.xlane.xlu1 %30 }
  0x8d   :  { %v42_v14 = vmul.f32 0.03125, %v25_v12  ;;  %v44_v15 = vmul.f32 0.03125, %v31_v13 }
  0x8f   :  { %v48_v16 = vsub.f32 %v14_v0, %v42_v14  ;;  %v194_v17 = vsub.f32 %v16_v1, %v44_v15 }
  0x90   :  { %v28_v18 = vpop.xlane.xlu0 %27  ;;  %v34_v19 = vpop.xlane.xlu1 %33 }
  0x91   :  { %v43_v20 = vmul.f32 0.03125, %v28_v18  ;;  %v45_v21 = vmul.f32 0.03125, %v34_v19  ;;  %v54_v22 = vmul.f32 %v48_v16, %v48_v16  ;;  %v56_v23 = vmul.f32 %v194_v17, %v194_v17 }
  0x93   :  { %v49_v24 = vsub.f32 %v15_v2, %v43_v20  ;;  %v198_v25 = vsub.f32 %v17_v5, %v45_v21  ;;  %v60_v26 = vsel %vm22_vm0, %v54_v22, 0.0  ;;  %v66_v29 = vsel %vm22_vm0, %v56_v23, 0.0 }
  0x94   :  { %61 = vadd.xlane.f32.xlu0 %v60_v26  ;;  %v37_v27 = vpop.xlane.xlu0 %36  ;;  %v40_v28 = vpop.xlane.xlu1 %39 }
  0x95   :  { %v46_v30 = vmul.f32 0.03125, %v37_v27  ;;  %v47_v31 = vmul.f32 0.03125, %v40_v28  ;;  %v55_v32 = vmul.f32 %v49_v24, %v49_v24  ;;  %v57_v33 = vmul.f32 %v198_v25, %v198_v25 }
  0x97   :  { %v52_v34 = vsub.f32 %v18_v8, %v46_v30  ;;  %v204_v35 = vsub.f32 %v19_v9, %v47_v31  ;;  %v63_v36 = vsel %vm22_vm0, %v55_v32, 0.0  ;;  %v69_v37 = vsel %vm22_vm0, %v57_v33, 0.0 }
  0x98   :  { %67 = vadd.xlane.f32.xlu0 %v66_v29  ;;  %64 = vadd.xlane.f32.xlu1 %v63_v36 }
  0x99   :  { %v58_v38 = vmul.f32 %v52_v34, %v52_v34  ;;  %v59_v39 = vmul.f32 %v204_v35, %v204_v35 }
  0x9b   :  { %v72_v40 = vsel %vm22_vm0, %v58_v38, 0.0  ;;  %v75_v41 = vsel %vm22_vm0, %v59_v39, 0.0 }
  0x9c   :  { %70 = vadd.xlane.f32.xlu1 %v69_v37  ;;  %73 = vadd.xlane.f32.xlu0 %v72_v40 }
  0xa0   :  { %76 = vadd.xlane.f32.xlu1 %v75_v41 }
 0x11d   :  { %v62_v42 = vpop.xlane.xlu0 %61 }
 0x11e   :  { %v78_v43 = vmul.f32 0.03125, %v62_v42 }
 0x120   :  { %v84_v44 = vadd.f32 1e-12, %v78_v43 }
 0x121   :  { %v65_v45 = vpop.xlane.xlu1 %64  ;;  %v68_v46 = vpop.xlane.xlu0 %67 }
 0x122   :  { %138 = vrsqrt.f32 %v84_v44  ;;  %v79_v47 = vmul.f32 0.03125, %v65_v45  ;;  %v80_v48 = vmul.f32 0.03125, %v68_v46 }
 0x124   :  { %v85_v49 = vadd.f32 1e-12, %v79_v47  ;;  %v86_v50 = vadd.f32 1e-12, %v80_v48 }
 0x125   :  { %v71_v51 = vpop.xlane.xlu1 %70  ;;  %v74_v52 = vpop.xlane.xlu0 %73 }
 0x126   :  { %140 = vrsqrt.f32 %v85_v49  ;;  %v81_v53 = vmul.f32 0.03125, %v71_v51  ;;  %v82_v54 = vmul.f32 0.03125, %v74_v52 }
 0x127   :  { %142 = vrsqrt.f32 %v86_v50 }
 0x128   :  { %v87_v55 = vadd.f32 1e-12, %v81_v53  ;;  %v88_v56 = vadd.f32 1e-12, %v82_v54 }
 0x129   :  { %v77_v57 = vpop.xlane.xlu1 %76 }
 0x12a   :  { %144 = vrsqrt.f32 %v87_v55  ;;  %v83_v58 = vmul.f32 0.03125, %v77_v57 }
 0x12b   :  { %146 = vrsqrt.f32 %v88_v56 }
 0x12c   :  { %v89_v59 = vadd.f32 1e-12, %v83_v58 }
 0x12e   :  { %148 = vrsqrt.f32 %v89_v59 }
 0x12f   :  { %v139_v60 = vpop.eup %138 }
 0x130   :  { %v96_v62 = vmul.f32 %v139_v60, %v48_v16 }
 0x132   :  { %v108_v0 = vmul.f32 %v136_v61, %v96_v62 }
 0x133   :  { %v141_v1 = vpop.eup %140 }
 0x134   :  { %v143_v2 = vpop.eup %142  ;;  %v120_v3 = vadd.f32 %v137_v63, %v108_v0  ;;  %v97_v4 = vmul.f32 %v141_v1, %v49_v24 }
 0x135   :  { %v98_v5 = vmul.f32 %v143_v2, %v194_v17 }
 0x136   :  { %126 = vst.msk [vmem:[%s248_s3] sm:$0xff] %vm22_vm0, %v120_v3  ;;  %v109_v6 = vmul.f32 %v136_v61, %v97_v4 }
 0x137   :  { %v145_v7 = vpop.eup %144  ;;  %v110_v8 = vmul.f32 %v136_v61, %v98_v5 }
 0x138   :  { %v147_v9 = vpop.eup %146  ;;  %v121_v10 = vadd.f32 %v137_v63, %v109_v6  ;;  %v99_v11 = vmul.f32 %v145_v7, %v198_v25 }
 0x139   :  { %v122_v12 = vadd.f32 %v137_v63, %v110_v8  ;;  %v100_v13 = vmul.f32 %v147_v9, %v52_v34 }
 0x13a   :  { %127 = vst.msk [vmem:[%s248_s3 + $0x8] sm:$0xff] %vm22_vm0, %v121_v10  ;;  %v111_v14 = vmul.f32 %v136_v61, %v99_v11 }
 0x13b   :  { %v149_v15 = vpop.eup %148  ;;  %128 = vst.msk [vmem:[%s248_s3 + $0x10] sm:$0xff] %vm22_vm0, %v122_v12  ;;  %v112_v16 = vmul.f32 %v136_v61, %v100_v13 }
 0x13c   :  { %v123_v17 = vadd.f32 %v137_v63, %v111_v14  ;;  %v101_v18 = vmul.f32 %v149_v15, %v204_v35 }
 0x13d   :  { %v124_v19 = vadd.f32 %v137_v63, %v112_v16 }
 0x13e   :  { %129 = vst.msk [vmem:[%s248_s3 + $0x18] sm:$0xff] %vm22_vm0, %v123_v17  ;;  %v113_v20 = vmul.f32 %v136_v61, %v101_v18 }
 0x13f   :  { %130 = vst.msk [vmem:[%s248_s3 + $0x20] sm:$0xff] %vm22_vm0, %v124_v19 }
 0x140   :  { %v125_v21 = vadd.f32 %v137_v63, %v113_v20 }
 0x142   :  { %131 = vst.msk [vmem:[%s248_s3 + $0x28] sm:$0xff] %vm22_vm0, %v125_v21 }

// kernel: model_forward.7
= control target key start
LH: loop header
LB: loop body
LE: loop exit
PB: predicated region body
PF: predicated region fallthrough
CT: control target
= control target key end

     0   :  { %s567_s0 = inlined_call_operand.vmem [shape: f32[3,2,32], index: 0, kind: input, shape index: {}]   ;;  %s568_s1 = inlined_call_operand.vmem [shape: f32[32,32], index: 1, kind: input, shape index: {}]   ;;  %s569_s2 = inlined_call_operand.vmem [shape: f32[1,32], index: 2, kind: input, shape index: {}]   ;;  %s570_s3 = inlined_call_operand.vmem [shape: f32[32,32], index: 3, kind: input, shape index: {}]   ;;  %s571_s4 = inlined_call_operand.<no memory space> [shape: f32[1,1], index: 4, kind: input, shape index: {}]   ;;  %s572_s5 = inlined_call_operand.hbm [shape: f32[2,2], index: 5, kind: output, shape index: {}]  }
   0x1   :  { %v10_v0 = vstv %s571_s4 }
   0x2   :  { %11 = vst [vmem:[#allocation2] sm:$0x1] %v10_v0 }
   0x3   :  { %v26_v1 = vld [vmem:[%s568_s1 + $0x18] sm:$0xff]  ;;  %v483_v2 = vmov 0.0   ;;  %v25_v3 = vld [vmem:[%s568_s1 + $0x10] sm:$0xff]  ;;  %vm484_vm0 = vmmov 0  }
   0x4   :  { %405 = vmatprep.subr.mxu0 %v483_v2  ;;  %413 = vmatprep.mubr.msk.f32.mxu0 %vm484_vm0, %v483_v2 }
   0x5   :  { %406 = vmatpush3.msra.mxu0 %v26_v1  ;;  %416 = vmatprep.subr.mxu1 %v483_v2 }
   0x6   :  { %12 = vsyncpa [#allocation4], 0  ;;  %407 = vmatprep.subr.mxu0 %v483_v2  ;;  %v24_v4 = vld [vmem:[%s568_s1 + $0x8] sm:$0xff]  ;;  %417 = vmatpush3.msra.mxu1 %v26_v1  ;;  %v23_v5 = vld [vmem:[%s568_s1] sm:$0xff]  ;;  %vm35_vm1 = vcmask 261120   ;;  %v485_v23 = vmov 0  }
   0x7   :  { %408 = vmatpush3.msra.mxu0 %v25_v3  ;;  %418 = vmatprep.subr.mxu1 %v483_v2  ;;  %v28_v6 = vld [vmem:[%s567_s0] sm:$0x3]  ;;  %v379_v7 = vld [vmem:[%s567_s0 + $0x2] sm:$0x3]  ;;  %v381_v8 = vld [vmem:[%s567_s0 + $0x4] sm:$0x3] }
   0x8   :  { %409 = vmatprep.subr.mxu0 %v483_v2  ;;  %419 = vmatpush3.msra.mxu1 %v25_v3  ;;  %v265_v9 = vld [vmem:[%s570_s3 + $0x18] sm:$0xff]  ;;  %v264_v10 = vld [vmem:[%s570_s3 + $0x10] sm:$0xff]  ;;  %v263_v11 = vld [vmem:[%s570_s3 + $0x8] sm:$0xff]  ;;  %vm340_vm2 = vcmask 254976   ;;  %vm348_vm3 = vcmask 7168   ;;  %vm361_vm4 = vcmask 9216  }
   0x9   :  { %410 = vmatpush3.msra.mxu0 %v24_v4  ;;  %420 = vmatprep.subr.mxu1 %v483_v2  ;;  %v262_v12 = vld [vmem:[%s570_s3] sm:$0xff] }
   0xa   :  { %411 = vmatprep.subr.mxu0 %v483_v2  ;;  %421 = vmatpush3.msra.mxu1 %v24_v4  ;;  %v377_v13 = vld [vmem:[%s569_s2] ss:$0 sm:$0xff]  ;;  %s486_s2 = smov [#allocation3]  }
   0xb   :  { %412 = vmatpush3.msra.mxu0 %v23_v5  ;;  %422 = vmatprep.subr.mxu1 %v483_v2  ;;  %v384_v22 = vld [vmem:[#allocation2] ss:$0 sm:$0xff]  ;;  %s369_s3 = sshll.u32 %s486_s2, 4  ;;  %s370_s3 = int_to_ptr.vmem [resolvable:$true] %s369_s3 }
   0xc   :  { %414 = vmatmul.mubr.msk.f32.vlgmr.msra.gmra.mxu0 %vm35_vm1, %v28_v6  ;;  %427 = vmatprep.subr.mxu0 %v483_v2  ;;  %s461_s16 = scalar_lea.vmem %s370_s3, 32  ;;  %p466_p1 = scmp.lt.s32.totalorder %s370_s3, %s370_s3 }
   0xd   :  { %428 = vmatpush3.msra.mxu0 %v26_v1  ;;  %423 = vmatpush3.msra.mxu1 %v23_v5  ;;  %p462_p0 = scmp.ne.s32.totalorder %s370_s3, %s461_s16  ;;  %p467_p2 = scmp.lt.s32.totalorder %s461_s16, %s461_s16 }
   0xe   :  { %429 = vmatprep.subr.mxu0 %v483_v2  ;;  %424 = vmatprep.mubr.msk.f32.mxu1 %vm484_vm0, %v483_v2 }
   0xf   :  { %430 = vmatpush3.msra.mxu0 %v25_v3  ;;  %425 = vmatmul.mubr.msk.f32.vlgmr.msra.gmra.mxu1 %vm35_vm1, %v379_v7  ;;  %p468_p3 = por %p467_p2, %p466_p1 }
  0x10   :  { %431 = vmatprep.subr.mxu0 %v483_v2  ;;  %435 = vmatprep.mubr.msk.f32.mxu0 %vm484_vm0, %v483_v2 }
  0x11   :  { %432 = vmatpush3.msra.mxu0 %v24_v4  ;;  %438 = vmatprep.subr.mxu1 %v483_v2  ;;  %p469_p4 = pnand %p468_p3, %p462_p0 }
  0x12   :  { %433 = vmatprep.subr.mxu0 %v483_v2  ;;  %446 = vmatprep.mubr.msk.f32.mxu1 %vm484_vm0, %v483_v2 }
  0x13   :  { %434 = vmatpush3.msra.mxu0 %v23_v5  ;;  %439 = vmatpush3.msra.mxu1 %v265_v9 }
  0x14   :  { %436 = vmatmul.mubr.msk.f32.vlgmr.msra.gmra.mxu0 %vm35_vm1, %v381_v8  ;;  %440 = vmatprep.subr.mxu1 %v483_v2 }
  0x15   :  { %441 = vmatpush3.msra.mxu1 %v264_v10  ;;  %453 = vset.pattern.permute.xlu1 %v485_v23 }
  0x16   :  { %442 = vmatprep.subr.mxu1 %v483_v2  ;;  %454 = vset.pattern.permute.xlu0 %v485_v23 }
  0x17   :  { %443 = vmatpush3.msra.mxu1 %v263_v11  ;;  %357 = vperm.xlu1 %453, %v384_v22  }
  0x18   :  { %444 = vmatprep.subr.mxu1 %v483_v2 }
  0x19   :  { %445 = vmatpush3.msra.mxu1 %v262_v12 }
  0x92   :  { %v358_v35 = vpop.permute.xlu1 %357 }
  0xcc   :  { %v105_v14 = vpop.f32.mrf.mxu0 }
  0xcd   :  { %v106_v15 = vadd.f32 %v377_v13, %v105_v14 }
  0xce   :  { %v415_v16 = vpop.f32.mrf.mxu0 }
  0xcf   :  { %455 = vtanh.f32 %v106_v15  ;;  %v181_v17 = vpop.f32.mrf.mxu1 }
  0xd0   :  { %v182_v24 = vadd.f32 %v377_v13, %v181_v17 }
  0xd1   :  { %v426_v18 = vpop.f32.mrf.mxu1 }
  0xd2   :  { %457 = vtanh.f32 %v182_v24 }
  0xd4   :  { %v257_v20 = vpop.f32.mrf.mxu0 }
  0xd5   :  { %v258_v25 = vadd.f32 %v377_v13, %v257_v20 }
  0xd6   :  { %v437_v21 = vpop.f32.mrf.mxu0 }
  0xd7   :  { %459 = vtanh.f32 %v258_v25 }
  0xdc   :  { %v456_v19 = vpop.eup %455 }
  0xdd   :  { %447 = vmatmul.mubr.msk.f32.vlgmr.msra.gmra.mxu1 %vm35_vm1, %v456_v19 }
  0xdf   :  { %v458_v26 = vpop.eup %457 }
  0xe4   :  { %v460_v27 = vpop.eup %459 }
 0x19d   :  { %v335_v28 = vpop.f32.mrf.mxu1 }
 0x19e   :  { %v339_v29 = vmul.f32 %v458_v26, %v335_v28  ;;  %v344_v31 = vmul.f32 %v460_v27, %v335_v28 }
 0x19f   :  { %v448_v30 = vpop.f32.mrf.mxu1 }
 0x1a0   :  { %v341_v32 = vsel %vm340_vm2, %v339_v29, 0.0  ;;  %v345_v33 = vsel %vm340_vm2, %v344_v31, 0.0 }
 0x1a1   :  { %342 = vadd.xlane.f32.xlu0 %v341_v32 }
 0x1a5   :  { %346 = vadd.xlane.f32.xlu0 %v345_v33 }
 0x22a   :  { %v343_v34 = vpop.xlane.xlu0 %342 }
 0x22e   :  { %v347_v36 = vpop.xlane.xlu0 %346 }
 0x22f   :  { %v349_v37 = vsel %vm348_vm3, %v343_v34, %v347_v36 }
 0x230   :  { %v360_v38 = vadd.f32 %v358_v35, %v349_v37 }
 0x232   :  { %362 = vst.msk [vmem:[#allocation3] sm:$0x3] %vm361_vm4, %v360_v38 }
 0x233   :  { %472 = shalt.err (!%p469_p4)
}
 0x234   :  { %372 = dma.vmem_to_hbm [thread:$0]  %s370_s3, 32, %s572_s5, [#allocation4]  }
 0x235   :  { %481 = dma.done.wait [#allocation4], 32  }
 0x236   :  { %482 = vsyncadd [#allocation4], 4294967264 }
 0x237   :  { %376 = vsyncpa [#allocation4], 1 }

// kernel: model_forward.5
= control target key start
LH: loop header
LB: loop body
LE: loop exit
PB: predicated region body
PF: predicated region fallthrough
CT: control target
= control target key end

     0   :  { %vm61_vm0 = vcmask 261120   ;;  %v5630_v10 = vmov 0.0   ;;  %vm5631_vm1 = vmmov 0   ;;  %s5632_s29 = smov 96   ;;  %vm178_vm2 = vcmask 64512   ;;  %s5634_s30 = smov 88   ;;  %s6433_s1 = inlined_call_operand.vmem [shape: f32[32,96], index: 1, kind: input, shape index: {}]   ;;  %s6434_s0 = inlined_call_operand.vmem [shape: f32[48,32], index: 0, kind: input, shape index: {}]   ;;  %s6435_s2 = inlined_call_operand.vmem [shape: f32[1,96], index: 2, kind: input, shape index: {}]   ;;  %s6436_s3 = inlined_call_operand.vmem [shape: f32[32,32], index: 3, kind: input, shape index: {}]   ;;  %s6437_s4 = inlined_call_operand.vmem [shape: f32[1,32], index: 4, kind: input, shape index: {}]   ;;  %s6438_s7 = inlined_call_operand.vmem [shape: f32[32,64], index: 7, kind: input, shape index: {}]   ;;  %s6439_s5 = inlined_call_operand.vmem [shape: f32[1,32], index: 5, kind: input, shape index: {}]   ;;  %s6440_s6 = inlined_call_operand.vmem [shape: f32[1,32], index: 6, kind: input, shape index: {}]   ;;  %s6441_s9 = inlined_call_operand.vmem [shape: f32[64,32], index: 9, kind: input, shape index: {}]   ;;  %s6442_s8 = inlined_call_operand.vmem [shape: f32[1,64], index: 8, kind: input, shape index: {}]   ;;  %s6443_s10 = inlined_call_operand.vmem [shape: f32[1,32], index: 10, kind: input, shape index: {}]   ;;  %s6444_s11 = inlined_call_operand.vmem [shape: f32[1,32], index: 11, kind: input, shape index: {}]   ;;  %s6445_s12 = inlined_call_operand.vmem [shape: f32[1,32], index: 12, kind: input, shape index: {}]   ;;  %s6446_s13 = inlined_call_operand.vmem [shape: f32[48,32], index: 13, kind: output, shape index: {}]  }
   0x1   :  { %v53_v0 = vld [vmem:[%s6433_s1 + $0x18] sm:$0xff]  ;;  %v52_v1 = vld [vmem:[%s6433_s1 + $0x10] sm:$0xff]  ;;  %v51_v2 = vld [vmem:[%s6433_s1 + $0x8] sm:$0xff]  ;;  %s5635_s14 = smov 120   ;;  %s5636_s15 = smov 56   ;;  %vm4239_vm3 = vcmask 195584  }
   0x2   :  { %5152 = vmatprep.subr.mxu0 %v53_v0  ;;  %5468 = vmatprep.subr.mxu1 %v53_v0  ;;  %v50_v3 = vld [vmem:[%s6433_s1] sm:$0xff]  ;;  %v45_v5 = vld [vmem:[%s6434_s0 + $0x8] sm:$0xff]  ;;  %v46_v6 = vld [vmem:[%s6434_s0 + $0x10] sm:$0xff]  ;;  %s5637_s16 = smov 80   ;;  %s5638_s17 = smov 112   ;;  %vm4232_vm4 = vcmask 130048  }
   0x3   :  { %5153 = vmatpush3.msra.mxu0 %v53_v0  ;;  %5472 = vmatpush3.msra.mxu1 %v53_v0  ;;  %v44_v4 = vld [vmem:[%s6434_s0] sm:$0xff]  ;;  %v47_v7 = vld [vmem:[%s6434_s0 + $0x18] sm:$0xff]  ;;  %v49_v9 = vld [vmem:[%s6434_s0 + $0x28] sm:$0xff]  ;;  %s5639_s18 = smov 48   ;;  %s5640_s19 = smov 72   ;;  %vm4674_vm5 = vcmask 523264  }
   0x4   :  { %5154 = vmatprep.subr.mxu0 %v52_v1  ;;  %5469 = vmatprep.subr.mxu1 %v52_v1  ;;  %v48_v8 = vld [vmem:[%s6434_s0 + $0x20] sm:$0xff]  ;;  %s5641_s20 = smov 104   ;;  %s5642_s21 = smov 40  }
   0x5   :  { %5155 = vmatpush3.msra.mxu0 %v52_v1  ;;  %5473 = vmatpush3.msra.mxu1 %v52_v1  ;;  %v4908_v12 = vld [vmem:[%s6435_s2] ss:$0 sm:$0xff]  ;;  %s5633_s2 = smov 64   ;;  %s5643_s1 = smov 8  }
   0x6   :  { %5156 = vmatprep.subr.mxu0 %v51_v2  ;;  %5470 = vmatprep.subr.mxu1 %v51_v2  ;;  %s5644_s22 = smov 16  }
   0x7   :  { %5157 = vmatpush3.msra.mxu0 %v51_v2  ;;  %5474 = vmatpush3.msra.mxu1 %v51_v2 }
   0x8   :  { %5158 = vmatprep.subr.mxu0 %v50_v3  ;;  %5160 = vmatprep.mubr.msk.f32.mxu0 %vm61_vm0, %v44_v4 }
   0x9   :  { %5159 = vmatpush3.msra.mxu0 %v50_v3  ;;  %5471 = vmatprep.subr.mxu1 %v50_v3 }
   0xa   :  { %5161 = vmatmul.mubr.msk.f32.vlgmr.msra.gmra.mxu0 %vm61_vm0, %v45_v5  ;;  %5475 = vmatpush3.msra.mxu1 %v50_v3 }
   0xb   :  { %5163 = vmatprep.mubr.msk.f32.mxu1 %vm61_vm0, %v46_v6  ;;  %5169 = vmatprep.subr.mxu1 %v5630_v10 }
   0xc   :  { %5164 = vmatmul.mubr.msk.f32.vlgmr.msra.gmra.mxu1 %vm61_vm0, %v47_v7  ;;  %5189 = vmatprep.subr.mxu0 %v5630_v10 }
   0xd   :  { %5166 = vmatprep.mubr.msk.f32.mxu1 %vm61_vm0, %v48_v8  ;;  %5191 = vmatprep.mubr.msk.f32.mxu0 %vm5631_vm1, %v5630_v10 }
  0x10   :  { %5167 = vmatmul.mubr.msk.f32.gmra.mxu1 %vm61_vm0, %v49_v9 }
  0x11   :  { %5171 = vmatprep.mubr.msk.f32.mxu1 %vm5631_vm1, %v5630_v10 }
  0xca   :  { %v5162_v11 = vpop.f32.mrf.mxu0 }
  0xcb   :  { %v5766_v19 = vadd.f32 %v5162_v11, %v4908_v12 }
  0xcc   :  { %v146_v13 = vpop.f32.mrf.mxu0  ;;  %v5165_v14 = vpop.f32.mrf.mxu1 }
  0xcd   :  { %v5761_v15 = vadd.f32 %v4908_v12, %v146_v13  ;;  %v5769_v21 = vadd.f32 %v5165_v14, %v4908_v12 }
  0xce   :  { %v156_v16 = vpop.f32.mrf.mxu1 }
  0xcf   :  { %v5763_v17 = vadd.f32 %v4908_v12, %v156_v16  ;;  %176 = vrot.lane.b32.xlu0 %v5761_v15, %s5632_s29 }
  0xd0   :  { %v5168_v18 = vpop.f32.mrf.mxu1 }
  0xd1   :  { %331 = vrot.lane.b32.xlu1 %v5763_v17, %s5632_s29  ;;  %v5775_v23 = vadd.f32 %v5168_v18, %v4908_v12 }
  0xd2   :  { %v166_v20 = vpop.f32.mrf.mxu1 }
  0xd3   :  { %254 = vrot.lane.b32.xlu0 %v5766_v19, %s5632_s29  ;;  %v5772_v22 = vadd.f32 %v4908_v12, %v166_v20 }
  0xd5   :  { %408 = vrot.lane.b32.xlu1 %v5769_v21, %s5632_s29 }
  0xd7   :  { %485 = vrot.lane.b32.xlu0 %v5772_v22, %s5632_s29 }
  0xd9   :  { %562 = vrot.lane.b32.xlu1 %v5775_v23, %s5632_s29 }
 0x141   :  { %v177_v24 = vpop.permute.xlu0 %176 }
 0x142   :  { %5170 = vmatpush3.xpose.msk.msra.mxu1 %vm178_vm2, %v177_v24 }
 0x143   :  { %5174 = vmatprep.subr.mxu1 %v5630_v10  ;;  %v332_v25 = vpop.permute.xlu1 %331 }
 0x145   :  { %5172 = vmatmul.mubr.msk.f32.vlgmr.msra.gmra.mxu1 %vm178_vm2, %v5761_v15  ;;  %v255_v26 = vpop.permute.xlu0 %254 }
 0x146   :  { %5175 = vmatpush3.xpose.msk.msra.mxu1 %vm178_vm2, %v255_v26  ;;  %5176 = vmatprep.mubr.msk.f32.mxu1 %vm5631_vm1, %v5630_v10 }
 0x147   :  { %5179 = vmatprep.subr.mxu1 %v5630_v10  ;;  %v409_v28 = vpop.permute.xlu1 %408 }
 0x149   :  { %5177 = vmatmul.mubr.msk.f32.vlgmr.msra.gmra.mxu1 %vm178_vm2, %v5766_v19  ;;  %v486_v27 = vpop.permute.xlu0 %485 }
 0x14a   :  { %5180 = vmatpush3.xpose.msk.msra.mxu1 %vm178_vm2, %v332_v25  ;;  %5190 = vmatpush3.xpose.msk.msra.mxu0 %vm178_vm2, %v486_v27 }
 0x14b   :  { %5181 = vmatprep.mubr.msk.f32.mxu1 %vm5631_vm1, %v5630_v10  ;;  %5184 = vmatprep.subr.mxu1 %v5630_v10  ;;  %v563_v29 = vpop.permute.xlu1 %562 }
 0x14c   :  { %5199 = vmatprep.subr.mxu0 %v5630_v10 }
 0x14d   :  { %5182 = vmatmul.mubr.msk.f32.vlgmr.msra.gmra.mxu1 %vm178_vm2, %v5763_v17  ;;  %5192 = vmatmul.mubr.msk.f32.vlgmr.msra.gmra.mxu0 %vm178_vm2, %v5772_v22 }
 0x14e   :  { %5185 = vmatpush3.xpose.msk.msra.mxu1 %vm178_vm2, %v409_v28  ;;  %5186 = vmatprep.mubr.msk.f32.mxu1 %vm5631_vm1, %v5630_v10 }
 0x14f   :  { %5194 = vmatprep.subr.mxu1 %v5630_v10  ;;  %5201 = vmatprep.mubr.msk.f32.mxu0 %vm5631_vm1, %v5630_v10 }
 0x151   :  { %5187 = vmatmul.mubr.msk.f32.vlgmr.msra.gmra.mxu1 %vm178_vm2, %v5769_v21 }
 0x152   :  { %5195 = vmatpush3.xpose.msk.msra.mxu1 %vm178_vm2, %v563_v29  ;;  %5196 = vmatprep.mubr.msk.f32.mxu1 %vm5631_vm1, %v5630_v10 }
 0x153   :  { %5204 = vmatprep.subr.mxu1 %v5630_v10 }
 0x155   :  { %5197 = vmatmul.mubr.msk.f32.vlgmr.msra.gmra.mxu1 %vm178_vm2, %v5775_v23 }
 0x156   :  { %5206 = vmatprep.mubr.msk.f32.mxu1 %vm5631_vm1, %v5630_v10 }
 0x205   :  { %v249_v30 = vpop.f32.mrf.mxu1 }
 0x206   :  { %v638_v31 = vmul.f32 0.35355338, %v249_v30 }
 0x207   :  { %v5173_v32 = vpop.f32.mrf.mxu1 }
 0x208   :  { %v644_v33 = vsel %vm178_vm2, %v638_v31, -inf }
 0x209   :  { %645 = vmax.xlane.f32.xlu0 %v644_v33  ;;  %v326_v34 = vpop.f32.mrf.mxu1 }
 0x20a   :  { %v639_v35 = vmul.f32 0.35355338, %v326_v34 }
 0x20b   :  { %v5178_v36 = vpop.f32.mrf.mxu1 }
 0x20c   :  { %v647_v37 = vsel %vm178_vm2, %v639_v35, -inf }
 0x20d   :  { %648 = vmax.xlane.f32.xlu1 %v647_v37  ;;  %v403_v38 = vpop.f32.mrf.mxu1  ;;  %v557_v39 = vpop.f32.mrf.mxu0 }
 0x20e   :  { %v640_v40 = vmul.f32 0.35355338, %v403_v38  ;;  %v642_v41 = vmul.f32 0.35355338, %v557_v39 }
 0x20f   :  { %v5183_v42 = vpop.f32.mrf.mxu1  ;;  %v5193_v43 = vpop.f32.mrf.mxu0 }
 0x210   :  { %v650_v44 = vsel %vm178_vm2, %v640_v40, -inf  ;;  %v656_v45 = vsel %vm178_vm2, %v642_v41, -inf }
 0x211   :  { %651 = vmax.xlane.f32.xlu0 %v650_v44  ;;  %v480_v46 = vpop.f32.mrf.mxu1  ;;  %657 = vmax.xlane.f32.xlu1 %v656_v45 }
 0x212   :  { %v641_v47 = vmul.f32 0.35355338, %v480_v46 }
 0x213   :  { %v5188_v48 = vpop.f32.mrf.mxu1 }
 0x214   :  { %v653_v49 = vsel %vm178_vm2, %v641_v47, -inf }
 0x215   :  { %654 = vmax.xlane.f32.xlu0 %v653_v49  ;;  %v634_v50 = vpop.f32.mrf.mxu1 }
 0x216   :  { %v643_v51 = vmul.f32 0.35355338, %v634_v50 }
 0x217   :  { %v5198_v52 = vpop.f32.mrf.mxu1 }
 0x218   :  { %v659_v53 = vsel %vm178_vm2, %v643_v51, -inf }
 0x219   :  { %660 = vmax.xlane.f32.xlu0 %v659_v53 }
 0x222   :  { %710 = vrot.lane.b32.xlu1 %v5761_v15, %s5633_s2 }
 0x226   :  { %862 = vrot.lane.b32.xlu1 %v5763_v17, %s5633_s2 }
 0x22a   :  { %938 = vrot.lane.b32.xlu1 %v5769_v21, %s5633_s2 }
 0x22e   :  { %1090 = vrot.lane.b32.xlu1 %v5775_v23, %s5633_s2 }
 0x22f   :  { %786 = vrot.lane.b32.xlu0 %v5766_v19, %s5633_s2 }
 0x232   :  { %1246 = vrot.lane.b32.xlu1 %v5766_v19, %s5634_s30 }
 0x233   :  { %1014 = vrot.lane.b32.xlu0 %v5772_v22, %s5633_s2 }
 0x236   :  { %1244 = vrot.lane.b32.xlu1 %v5766_v19, %s5635_s14 }
 0x237   :  { %1168 = vrot.lane.b32.xlu0 %v5761_v15, %s5634_s30 }
 0x23b   :  { %1166 = vrot.lane.b32.xlu0 %v5761_v15, %s5635_s14 }
 0x23f   :  { %1324 = vrot.lane.b32.xlu0 %v5763_v17, %s5634_s30 }
 0x292   :  { %v646_v54 = vpop.xlane.xlu0 %645 }
 0x293   :  { %v662_v55 = vsub.f32 %v638_v31, %v646_v54 }
 0x295   :  { %v668_v56 = vmul.f32 1.442695, %v662_v55 }
 0x296   :  { %v649_v57 = vpop.xlane.xlu1 %648 }
 0x297   :  { %5492 = vpow2.f32 %v668_v56  ;;  %v663_v58 = vsub.f32 %v639_v35, %v649_v57 }
 0x299   :  { %v670_v59 = vmul.f32 1.442695, %v663_v58 }
 0x29a   :  { %v658_v60 = vpop.xlane.xlu1 %657  ;;  %v652_v61 = vpop.xlane.xlu0 %651 }
 0x29b   :  { %5494 = vpow2.f32 %v670_v59  ;;  %v666_v62 = vsub.f32 %v642_v41, %v658_v60  ;;  %v664_v63 = vsub.f32 %v640_v40, %v652_v61 }
 0x29d   :  { %v676_v0 = vmul.f32 1.442695, %v666_v62  ;;  %v672_v1 = vmul.f32 1.442695, %v664_v63 }
 0x29e   :  { %v711_v2 = vpop.permute.xlu1 %710  ;;  %v655_v3 = vpop.xlane.xlu0 %654 }
 0x29f   :  { %5496 = vpow2.f32 %v676_v0  ;;  %v665_v4 = vsub.f32 %v641_v47, %v655_v3  ;;  %5200 = vmatpush3.msra.mxu0 %v711_v2 }
 0x2a0   :  { %5209 = vmatprep.subr.mxu0 %v5630_v10  ;;  %5498 = vpow2.f32 %v672_v1 }
 0x2a1   :  { %v674_v5 = vmul.f32 1.442695, %v665_v4 }
 0x2a2   :  { %v661_v6 = vpop.xlane.xlu0 %660  ;;  %v863_v29 = vpop.permute.xlu1 %862 }
 0x2a3   :  { %5500 = vpow2.f32 %v674_v5  ;;  %v667_v7 = vsub.f32 %v643_v51, %v661_v6 }
 0x2a4   :  { %v5493_v8 = vpop.eup %5492 }
 0x2a5   :  { %v678_v9 = vmul.f32 1.442695, %v667_v7  ;;  %v680_v11 = vsel %vm178_vm2, %v5493_v8, 0.0 }
 0x2a6   :  { %681 = vadd.xlane.f32.xlu1 %v680_v11  ;;  %v787_v12 = vpop.permute.xlu0 %786  ;;  %v939_v30 = vpop.permute.xlu1 %938 }
 0x2a7   :  { %5502 = vpow2.f32 %v678_v9  ;;  %5205 = vmatpush3.msra.mxu1 %v787_v12 }
 0x2a8   :  { %v5495_v13 = vpop.eup %5494  ;;  %5214 = vmatprep.subr.mxu1 %v5630_v10 }
 0x2a9   :  { %v683_v14 = vsel %vm178_vm2, %v5495_v13, 0.0 }
 0x2aa   :  { %684 = vadd.xlane.f32.xlu0 %v683_v14  ;;  %v1015_v31 = vpop.permute.xlu0 %1014  ;;  %v1091_v32 = vpop.permute.xlu1 %1090 }
 0x2ac   :  { %v5841_v16 = vpop.eup %5496 }
 0x2ad   :  { %v692_v18 = vsel %vm178_vm2, %v5841_v16, 0.0  ;;  %v5499_v20 = vpop.eup %5498 }
 0x2ae   :  { %693 = vadd.xlane.f32.xlu1 %v692_v18  ;;  %v686_v25 = vsel %vm178_vm2, %v5499_v20, 0.0  ;;  %v1169_v33 = vpop.permute.xlu0 %1168  ;;  %v1247_v34 = vpop.permute.xlu1 %1246 }
 0x2b0   :  { %v5501_v24 = vpop.eup %5500 }
 0x2b1   :  { %v689_v26 = vsel %vm178_vm2, %v5501_v24, 0.0 }
 0x2b2   :  { %687 = vadd.xlane.f32.xlu1 %v686_v25  ;;  %690 = vadd.xlane.f32.xlu0 %v689_v26  ;;  %v1167_v35 = vpop.permute.xlu0 %1166  ;;  %v1245_v36 = vpop.permute.xlu1 %1244 }
 0x2b4   :  { %v5503_v27 = vpop.eup %5502 }
 0x2b5   :  { %v695_v28 = vsel %vm178_vm2, %v5503_v27, 0.0 }
 0x2b6   :  { %696 = vadd.xlane.f32.xlu0 %v695_v28  ;;  %v1325_v37 = vpop.permute.xlu0 %1324 }
 0x2c3   :  { %1402 = vrot.lane.b32.xlu1 %v5769_v21, %s5634_s30 }
 0x2c7   :  { %1400 = vrot.lane.b32.xlu1 %v5769_v21, %s5635_s14 }
 0x2cb   :  { %1558 = vrot.lane.b32.xlu1 %v5775_v23, %s5634_s30 }
 0x2cc   :  { %1322 = vrot.lane.b32.xlu0 %v5763_v17, %s5635_s14 }
 0x2cf   :  { %1556 = vrot.lane.b32.xlu1 %v5775_v23, %s5635_s14 }
 0x2d0   :  { %1480 = vrot.lane.b32.xlu0 %v5772_v22, %s5634_s30  ;;  %s5645_s30 = smov 24  }
 0x2d4   :  { %1478 = vrot.lane.b32.xlu0 %v5772_v22, %s5635_s14 }
 0x32f   :  { %v682_v38 = vpop.xlane.xlu1 %681 }
 0x330   :  { %5504 = vrcp.f32 %v682_v38 }
 0x333   :  { %v685_v39 = vpop.xlane.xlu0 %684 }
 0x334   :  { %5506 = vrcp.f32 %v685_v39 }
 0x337   :  { %v694_v40 = vpop.xlane.xlu1 %693 }
 0x33b   :  { %v688_v41 = vpop.xlane.xlu1 %687  ;;  %v691_v42 = vpop.xlane.xlu0 %690 }
 0x33c   :  { %5508 = vrcp.f32 %v688_v41 }
 0x33d   :  { %v5505_v43 = vpop.eup %5504  ;;  %5510 = vrcp.f32 %v691_v42 }
 0x33e   :  { %5512 = vrcp.f32 %v694_v40  ;;  %v704_v44 = vmul.f32 %v5505_v43, %v5493_v8 }
 0x33f   :  { %v697_v45 = vpop.xlane.xlu0 %696  ;;  %v1403_v50 = vpop.permute.xlu1 %1402 }
 0x340   :  { %5514 = vrcp.f32 %v697_v45  ;;  %5202 = vmatmul.mubr.msk.f32.vlgmr.msra.gmra.mxu0 %vm178_vm2, %v704_v44 }
 0x341   :  { %v5507_v46 = vpop.eup %5506  ;;  %5210 = vmatpush3.msra.mxu0 %v863_v29  ;;  %5211 = vmatprep.mubr.msk.f32.mxu0 %vm5631_vm1, %v5630_v10 }
 0x342   :  { %v705_v47 = vmul.f32 %v5507_v46, %v5495_v13  ;;  %5219 = vmatprep.subr.mxu0 %v5630_v10 }
 0x343   :  { %v1323_v57 = vpop.permute.xlu0 %1322  ;;  %v1401_v58 = vpop.permute.xlu1 %1400 }
 0x344   :  { %5207 = vmatmul.mubr.msk.f32.vlgmr.msra.gmra.mxu1 %vm178_vm2, %v705_v47 }
 0x345   :  { %5215 = vmatpush3.msra.mxu1 %v939_v30  ;;  %5216 = vmatprep.mubr.msk.f32.mxu1 %vm5631_vm1, %v5630_v10 }
 0x346   :  { %5224 = vmatprep.subr.mxu1 %v5630_v10 }
 0x347   :  { %v1481_v59 = vpop.permute.xlu0 %1480  ;;  %v1559_v60 = vpop.permute.xlu1 %1558 }
 0x349   :  { %v5509_v48 = vpop.eup %5508 }
 0x34a   :  { %v5511_v49 = vpop.eup %5510  ;;  %v706_v51 = vmul.f32 %v5509_v48, %v5499_v20 }
 0x34b   :  { %v5513_v52 = vpop.eup %5512  ;;  %v707_v53 = vmul.f32 %v5511_v49, %v5501_v24  ;;  %v1479_v61 = vpop.permute.xlu0 %1478 }
 0x34c   :  { %5212 = vmatmul.mubr.msk.f32.vlgmr.msra.gmra.mxu0 %vm178_vm2, %v706_v51  ;;  %v708_v55 = vmul.f32 %v5513_v52, %v5841_v16  ;;  %v1557_v62 = vpop.permute.xlu1 %1556 }
 0x34d   :  { %v5515_v54 = vpop.eup %5514  ;;  %5217 = vmatmul.mubr.msk.f32.vlgmr.msra.gmra.mxu1 %vm178_vm2, %v707_v53  ;;  %5220 = vmatpush3.msra.mxu0 %v1015_v31 }
 0x34e   :  { %5225 = vmatpush3.msra.mxu1 %v1091_v32  ;;  %5221 = vmatprep.mubr.msk.f32.mxu0 %vm5631_vm1, %v5630_v10  ;;  %v709_v56 = vmul.f32 %v5515_v54, %v5503_v27 }
 0x34f   :  { %5226 = vmatprep.mubr.msk.f32.mxu1 %vm5631_vm1, %v5630_v10  ;;  %5229 = vmatprep.subr.mxu0 %v5630_v10 }
 0x350   :  { %5234 = vmatprep.subr.mxu1 %v5630_v10  ;;  %5222 = vmatmul.mubr.msk.f32.vlgmr.msra.gmra.mxu0 %vm178_vm2, %v708_v55 }
 0x351   :  { %5227 = vmatmul.mubr.msk.f32.vlgmr.msra.gmra.mxu1 %vm178_vm2, %v709_v56  ;;  %5230 = vmatpush3.xpose.msk.msra.mxu0 %vm178_vm2, %v1169_v33 }
 0x352   :  { %5235 = vmatpush3.xpose.msk.msra.mxu1 %vm178_vm2, %v1247_v34  ;;  %5231 = vmatprep.mubr.msk.f32.mxu0 %vm5631_vm1, %v5630_v10 }
 0x353   :  { %5236 = vmatprep.mubr.msk.f32.mxu1 %vm5631_vm1, %v5630_v10  ;;  %5239 = vmatprep.subr.mxu0 %v5630_v10 }
 0x354   :  { %5244 = vmatprep.subr.mxu1 %v5630_v10  ;;  %5232 = vmatmul.mubr.msk.f32.vlgmr.msra.gmra.mxu0 %vm178_vm2, %v1167_v35 }
 0x355   :  { %5237 = vmatmul.mubr.msk.f32.vlgmr.msra.gmra.mxu1 %vm178_vm2, %v1245_v36  ;;  %5240 = vmatpush3.xpose.msk.msra.mxu0 %vm178_vm2, %v1325_v37 }
 0x356   :  { %5245 = vmatpush3.xpose.msk.msra.mxu1 %vm178_vm2, %v1403_v50  ;;  %5241 = vmatprep.mubr.msk.f32.mxu0 %vm5631_vm1, %v5630_v10 }
 0x357   :  { %5246 = vmatprep.mubr.msk.f32.mxu1 %vm5631_vm1, %v5630_v10  ;;  %5249 = vmatprep.subr.mxu0 %v5630_v10 }
 0x358   :  { %5254 = vmatprep.subr.mxu1 %v5630_v10  ;;  %5242 = vmatmul.mubr.msk.f32.vlgmr.msra.gmra.mxu0 %vm178_vm2, %v1323_v57 }
 0x359   :  { %5247 = vmatmul.mubr.msk.f32.vlgmr.msra.gmra.mxu1 %vm178_vm2, %v1401_v58  ;;  %5250 = vmatpush3.xpose.msk.msra.mxu0 %vm178_vm2, %v1481_v59 }
 0x35a   :  { %5255 = vmatpush3.xpose.msk.msra.mxu1 %vm178_vm2, %v1559_v60  ;;  %5251 = vmatprep.mubr.msk.f32.mxu0 %vm5631_vm1, %v5630_v10 }
 0x35b   :  { %5256 = vmatprep.mubr.msk.f32.mxu1 %vm5631_vm1, %v5630_v10  ;;  %5259 = vmatprep.subr.mxu0 %v5630_v10 }
 0x35c   :  { %5252 = vmatmul.mubr.msk.f32.vlgmr.msra.gmra.mxu0 %vm178_vm2, %v1479_v61  ;;  %5264 = vmatprep.subr.mxu1 %v5630_v10 }
 0x35d   :  { %5257 = vmatmul.mubr.msk.f32.vlgmr.msra.gmra.mxu1 %vm178_vm2, %v1557_v62  ;;  %5261 = vmatprep.mubr.msk.f32.mxu0 %vm5631_vm1, %v5630_v10 }
 0x35e   :  { %5266 = vmatprep.mubr.msk.f32.mxu1 %vm5631_vm1, %v5630_v10 }
 0x400   :  { %v5915_v63 = vpop.f32.mrf.mxu0 }
 0x402   :  { %v5203_v0 = vpop.f32.mrf.mxu0 }
 0x404   :  { %v5917_v1 = vpop.f32.mrf.mxu1 }
 0x406   :  { %v5208_v2 = vpop.f32.mrf.mxu1 }
 0x40c   :  { %v5919_v3 = vpop.f32.mrf.mxu0 }
 0x40d   :  { %v5921_v4 = vpop.f32.mrf.mxu1 }
 0x40e   :  { %v5213_v5 = vpop.f32.mrf.mxu0 }
 0x40f   :  { %v5218_v6 = vpop.f32.mrf.mxu1 }
 0x410   :  { %v5923_v7 = vpop.f32.mrf.mxu0 }
 0x411   :  { %v5925_v8 = vpop.f32.mrf.mxu1 }
 0x412   :  { %v5223_v9 = vpop.f32.mrf.mxu0 }
 0x413   :  { %v5228_v11 = vpop.f32.mrf.mxu1 }
 0x414   :  { %v1240_v12 = vpop.f32.mrf.mxu0 }
 0x415   :  { %v1634_v13 = vmul.f32 0.35355338, %v1240_v12  ;;  %v1318_v14 = vpop.f32.mrf.mxu1 }
 0x416   :  { %v1635_v16 = vmul.f32 0.35355338, %v1318_v14  ;;  %v5233_v18 = vpop.f32.mrf.mxu0 }
 0x417   :  { %v5238_v20 = vpop.f32.mrf.mxu1  ;;  %v1640_v24 = vsel %vm178_vm2, %v1634_v13, -inf }
 0x418   :  { %1641 = vmax.xlane.f32.xlu0 %v1640_v24  ;;  %v1643_v25 = vsel %vm178_vm2, %v1635_v16, -inf  ;;  %v1396_v26 = vpop.f32.mrf.mxu0 }
 0x419   :  { %1644 = vmax.xlane.f32.xlu1 %v1643_v25  ;;  %v1636_v27 = vmul.f32 0.35355338, %v1396_v26  ;;  %v1474_v28 = vpop.f32.mrf.mxu1 }
 0x41a   :  { %v5243_v29 = vpop.f32.mrf.mxu0  ;;  %v1637_v30 = vmul.f32 0.35355338, %v1474_v28 }
 0x41b   :  { %v5248_v31 = vpop.f32.mrf.mxu1  ;;  %v1646_v32 = vsel %vm178_vm2, %v1636_v27, -inf }
 0x41c   :  { %1647 = vmax.xlane.f32.xlu0 %v1646_v32  ;;  %v1552_v33 = vpop.f32.mrf.mxu0  ;;  %v1649_v39 = vsel %vm178_vm2, %v1637_v30, -inf }
 0x41d   :  { %v1630_v34 = vpop.f32.mrf.mxu1  ;;  %v1638_v35 = vmul.f32 0.35355338, %v1552_v33 }
 0x41e   :  { %v5253_v36 = vpop.f32.mrf.mxu0  ;;  %v1639_v37 = vmul.f32 0.35355338, %v1630_v34 }
 0x41f   :  { %v5258_v38 = vpop.f32.mrf.mxu1  ;;  %v1652_v40 = vsel %vm178_vm2, %v1638_v35, -inf }
 0x420   :  { %1650 = vmax.xlane.f32.xlu0 %v1649_v39  ;;  %1653 = vmax.xlane.f32.xlu1 %v1652_v40  ;;  %v1655_v41 = vsel %vm178_vm2, %v1639_v37, -inf }
 0x424   :  { %1656 = vmax.xlane.f32.xlu0 %v1655_v41 }
 0x431   :  { %1706 = vrot.lane.b32.xlu1 %v5761_v15, %s5636_s15 }
 0x435   :  { %1858 = vrot.lane.b32.xlu1 %v5763_v17, %s5636_s15 }
 0x439   :  { %1934 = vrot.lane.b32.xlu1 %v5769_v21, %s5636_s15 }
 0x43a   :  { %1782 = vrot.lane.b32.xlu0 %v5766_v19, %s5636_s15 }
 0x43d   :  { %2086 = vrot.lane.b32.xlu1 %v5775_v23, %s5636_s15 }
 0x43e   :  { %2010 = vrot.lane.b32.xlu0 %v5772_v22, %s5636_s15 }
 0x441   :  { %2242 = vrot.lane.b32.xlu1 %v5766_v19, %s5637_s16 }
 0x442   :  { %2164 = vrot.lane.b32.xlu0 %v5761_v15, %s5637_s16 }
 0x445   :  { %2240 = vrot.lane.b32.xlu1 %v5766_v19, %s5638_s17 }
 0x446   :  { %2162 = vrot.lane.b32.xlu0 %v5761_v15, %s5638_s17 }
 0x449   :  { %2398 = vrot.lane.b32.xlu1 %v5769_v21, %s5637_s16 }
 0x44a   :  { %2320 = vrot.lane.b32.xlu0 %v5763_v17, %s5637_s16 }
 0x4a1   :  { %v1642_v42 = vpop.xlane.xlu0 %1641 }
 0x4a2   :  { %v1645_v43 = vpop.xlane.xlu1 %1644  ;;  %v1658_v44 = vsub.f32 %v1634_v13, %v1642_v42 }
 0x4a3   :  { %v1659_v45 = vsub.f32 %v1635_v16, %v1645_v43 }
 0x4a4   :  { %v1664_v46 = vmul.f32 1.442695, %v1658_v44 }
 0x4a5   :  { %v1666_v47 = vmul.f32 1.442695, %v1659_v45  ;;  %v1648_v48 = vpop.xlane.xlu0 %1647 }
 0x4a6   :  { %5516 = vpow2.f32 %v1664_v46  ;;  %v1660_v49 = vsub.f32 %v1636_v27, %v1648_v48 }
 0x4a7   :  { %5518 = vpow2.f32 %v1666_v47 }
 0x4a8   :  { %v1668_v50 = vmul.f32 1.442695, %v1660_v49 }
 0x4a9   :  { %v1654_v51 = vpop.xlane.xlu1 %1653  ;;  %v1651_v52 = vpop.xlane.xlu0 %1650 }
 0x4aa   :  { %5520 = vpow2.f32 %v1668_v50  ;;  %v1662_v53 = vsub.f32 %v1638_v35, %v1654_v51  ;;  %v1661_v54 = vsub.f32 %v1637_v30, %v1651_v52 }
 0x4ac   :  { %v1672_v55 = vmul.f32 1.442695, %v1662_v53  ;;  %v1670_v56 = vmul.f32 1.442695, %v1661_v54 }
 0x4ad   :  { %v1707_v57 = vpop.permute.xlu1 %1706  ;;  %v1657_v58 = vpop.xlane.xlu0 %1656 }
 0x4ae   :  { %5522 = vpow2.f32 %v1672_v55  ;;  %v1663_v59 = vsub.f32 %v1639_v37, %v1657_v58  ;;  %5260 = vmatpush3.msra.mxu0 %v1707_v57 }
 0x4af   :  { %5524 = vpow2.f32 %v1670_v56  ;;  %5269 = vmatprep.subr.mxu0 %v5630_v10 }
 0x4b0   :  { %v1674_v60 = vmul.f32 1.442695, %v1663_v59 }
 0x4b1   :  { %v1783_v61 = vpop.permute.xlu0 %1782  ;;  %v1859_v20 = vpop.permute.xlu1 %1858 }
 0x4b2   :  { %5526 = vpow2.f32 %v1674_v60  ;;  %5265 = vmatpush3.msra.mxu1 %v1783_v61 }
 0x4b3   :  { %v5517_v62 = vpop.eup %5516  ;;  %5274 = vmatprep.subr.mxu1 %v5630_v10 }
 0x4b4   :  { %v5519_v0 = vpop.eup %5518  ;;  %v1676_v2 = vsel %vm178_vm2, %v5517_v62, 0.0 }
 0x4b5   :  { %v1679_v5 = vsel %vm178_vm2, %v5519_v0, 0.0  ;;  %1677 = vadd.xlane.f32.xlu1 %v1676_v2  ;;  %v1935_v24 = vpop.permute.xlu1 %1934  ;;  %v2011_v26 = vpop.permute.xlu0 %2010 }
 0x4b6   :  { %1680 = vadd.xlane.f32.xlu0 %v1679_v5 }
 0x4b7   :  { %v5521_v6 = vpop.eup %5520 }
 0x4b8   :  { %v1682_v9 = vsel %vm178_vm2, %v5521_v6, 0.0 }
 0x4b9   :  { %1683 = vadd.xlane.f32.xlu1 %v1682_v9  ;;  %v2087_v25 = vpop.permute.xlu1 %2086  ;;  %v2165_v28 = vpop.permute.xlu0 %2164 }
 0x4bb   :  { %v5523_v11 = vpop.eup %5522 }
 0x4bc   :  { %v5525_v12 = vpop.eup %5524  ;;  %v1688_v13 = vsel %vm178_vm2, %v5523_v11, 0.0 }
 0x4bd   :  { %1689 = vadd.xlane.f32.xlu1 %v1688_v13  ;;  %v1685_v14 = vsel %vm178_vm2, %v5525_v12, 0.0  ;;  %v2243_v27 = vpop.permute.xlu1 %2242  ;;  %v2163_v30 = vpop.permute.xlu0 %2162 }
 0x4be   :  { %1686 = vadd.xlane.f32.xlu0 %v1685_v14 }
 0x4bf   :  { %v5527_v16 = vpop.eup %5526 }
 0x4c0   :  { %v1691_v18 = vsel %vm178_vm2, %v5527_v16, 0.0 }
 0x4c1   :  { %v2241_v29 = vpop.permute.xlu1 %2240  ;;  %v2321_v32 = vpop.permute.xlu0 %2320 }
 0x4c2   :  { %1692 = vadd.xlane.f32.xlu0 %v1691_v18 }
 0x4c5   :  { %v2399_v31 = vpop.permute.xlu1 %2398 }
 0x4ce   :  { %2396 = vrot.lane.b32.xlu1 %v5769_v21, %s5638_s17 }
 0x4d2   :  { %2554 = vrot.lane.b32.xlu1 %v5775_v23, %s5637_s16 }
 0x4d6   :  { %2552 = vrot.lane.b32.xlu1 %v5775_v23, %s5638_s17 }
 0x4d8   :  { %2318 = vrot.lane.b32.xlu0 %v5763_v17, %s5638_s17 }
 0x4dc   :  { %2476 = vrot.lane.b32.xlu0 %v5772_v22, %s5637_s16 }
 0x4e0   :  { %2474 = vrot.lane.b32.xlu0 %v5772_v22, %s5638_s17 }
 0x53e   :  { %v1678_v33 = vpop.xlane.xlu1 %1677 }
 0x53f   :  { %5528 = vrcp.f32 %v1678_v33  ;;  %v1681_v34 = vpop.xlane.xlu0 %1680 }
 0x540   :  { %5530 = vrcp.f32 %v1681_v34 }
 0x542   :  { %v1684_v35 = vpop.xlane.xlu1 %1683 }
 0x543   :  { %5532 = vrcp.f32 %v1684_v35 }
 0x546   :  { %v1690_v36 = vpop.xlane.xlu1 %1689 }
 0x547   :  { %5534 = vrcp.f32 %v1690_v36  ;;  %v1687_v37 = vpop.xlane.xlu0 %1686 }
 0x548   :  { %5536 = vrcp.f32 %v1687_v37 }
 0x54a   :  { %v2397_v52 = vpop.permute.xlu1 %2396 }
 0x54b   :  { %v1693_v38 = vpop.xlane.xlu0 %1692 }
 0x54c   :  { %v5529_v39 = vpop.eup %5528  ;;  %5538 = vrcp.f32 %v1693_v38 }
 0x54d   :  { %v5531_v40 = vpop.eup %5530  ;;  %v1700_v41 = vmul.f32 %v5529_v39, %v5517_v62 }
 0x54e   :  { %v1701_v42 = vmul.f32 %v5531_v40, %v5519_v0  ;;  %v2555_v54 = vpop.permute.xlu1 %2554 }
 0x54f   :  { %5262 = vmatmul.mubr.msk.f32.vlgmr.msra.gmra.mxu0 %vm178_vm2, %v1700_v41  ;;  %v2319_v48 = vpop.permute.xlu0 %2318 }
 0x550   :  { %v5533_v43 = vpop.eup %5532  ;;  %5267 = vmatmul.mubr.msk.f32.vlgmr.msra.gmra.mxu1 %vm178_vm2, %v1701_v42  ;;  %5270 = vmatpush3.msra.mxu0 %v1859_v20 }
 0x551   :  { %5275 = vmatpush3.msra.mxu1 %v1935_v24  ;;  %5271 = vmatprep.mubr.msk.f32.mxu0 %vm5631_vm1, %v5630_v10  ;;  %v1702_v44 = vmul.f32 %v5533_v43, %v5521_v6 }
 0x552   :  { %5279 = vmatprep.subr.mxu0 %v5630_v10  ;;  %5276 = vmatprep.mubr.msk.f32.mxu1 %vm5631_vm1, %v5630_v10  ;;  %v2553_v56 = vpop.permute.xlu1 %2552 }
 0x553   :  { %5272 = vmatmul.mubr.msk.f32.vlgmr.msra.gmra.mxu0 %vm178_vm2, %v1702_v44  ;;  %5284 = vmatprep.subr.mxu1 %v5630_v10  ;;  %v2477_v53 = vpop.permute.xlu0 %2476 }
 0x554   :  { %v5535_v45 = vpop.eup %5534  ;;  %5280 = vmatpush3.msra.mxu0 %v2011_v26  ;;  %5281 = vmatprep.mubr.msk.f32.mxu0 %vm5631_vm1, %v5630_v10 }
 0x555   :  { %v5537_v46 = vpop.eup %5536  ;;  %5289 = vmatprep.subr.mxu0 %v5630_v10  ;;  %v1704_v47 = vmul.f32 %v5535_v45, %v5523_v11 }
 0x556   :  { %v1703_v49 = vmul.f32 %v5537_v46, %v5525_v12 }
 0x557   :  { %5282 = vmatmul.mubr.msk.f32.vlgmr.msra.gmra.mxu0 %vm178_vm2, %v1704_v47  ;;  %v2475_v55 = vpop.permute.xlu0 %2474 }
 0x558   :  { %5277 = vmatmul.mubr.msk.f32.vlgmr.msra.gmra.mxu1 %vm178_vm2, %v1703_v49  ;;  %5290 = vmatpush3.xpose.msk.msra.mxu0 %vm178_vm2, %v2165_v28 }
 0x559   :  { %v5539_v50 = vpop.eup %5538  ;;  %5285 = vmatpush3.msra.mxu1 %v2087_v25  ;;  %5286 = vmatprep.mubr.msk.f32.mxu1 %vm5631_vm1, %v5630_v10 }
 0x55a   :  { %5291 = vmatprep.mubr.msk.f32.mxu0 %vm5631_vm1, %v5630_v10  ;;  %5294 = vmatprep.subr.mxu1 %v5630_v10  ;;  %v1705_v51 = vmul.f32 %v5539_v50, %v5527_v16 }
 0x55b   :  { %5299 = vmatprep.subr.mxu0 %v5630_v10  ;;  %5292 = vmatmul.mubr.msk.f32.vlgmr.msra.gmra.mxu0 %vm178_vm2, %v2163_v30 }
 0x55c   :  { %5287 = vmatmul.mubr.msk.f32.vlgmr.msra.gmra.mxu1 %vm178_vm2, %v1705_v51  ;;  %5300 = vmatpush3.xpose.msk.msra.mxu0 %vm178_vm2, %v2321_v32 }
 0x55d   :  { %5295 = vmatpush3.xpose.msk.msra.mxu1 %vm178_vm2, %v2243_v27  ;;  %5296 = vmatprep.mubr.msk.f32.mxu1 %vm5631_vm1, %v5630_v10 }
 0x55e   :  { %5301 = vmatprep.mubr.msk.f32.mxu0 %vm5631_vm1, %v5630_v10  ;;  %5304 = vmatprep.subr.mxu1 %v5630_v10 }
 0x55f   :  { %5309 = vmatprep.subr.mxu0 %v5630_v10  ;;  %5302 = vmatmul.mubr.msk.f32.vlgmr.msra.gmra.mxu0 %vm178_vm2, %v2319_v48 }
 0x560   :  { %5297 = vmatmul.mubr.msk.f32.vlgmr.msra.gmra.mxu1 %vm178_vm2, %v2241_v29  ;;  %5310 = vmatpush3.xpose.msk.msra.mxu0 %vm178_vm2, %v2477_v53 }
 0x561   :  { %5305 = vmatpush3.xpose.msk.msra.mxu1 %vm178_vm2, %v2399_v31  ;;  %5306 = vmatprep.mubr.msk.f32.mxu1 %vm5631_vm1, %v5630_v10 }
 0x562   :  { %5311 = vmatprep.mubr.msk.f32.mxu0 %vm5631_vm1, %v5630_v10  ;;  %5314 = vmatprep.subr.mxu1 %v5630_v10 }
 0x563   :  { %5312 = vmatmul.mubr.msk.f32.vlgmr.msra.gmra.mxu0 %vm178_vm2, %v2475_v55  ;;  %5319 = vmatprep.subr.mxu0 %v5630_v10 }
 0x564   :  { %5307 = vmatmul.mubr.msk.f32.vlgmr.msra.gmra.mxu1 %vm178_vm2, %v2397_v52  ;;  %5321 = vmatprep.mubr.msk.f32.mxu0 %vm5631_vm1, %v5630_v10 }
 0x565   :  { %5315 = vmatpush3.xpose.msk.msra.mxu1 %vm178_vm2, %v2555_v54  ;;  %5316 = vmatprep.mubr.msk.f32.mxu1 %vm5631_vm1, %v5630_v10 }
 0x566   :  { %5324 = vmatprep.subr.mxu1 %v5630_v10 }
 0x568   :  { %5317 = vmatmul.mubr.msk.f32.vlgmr.msra.gmra.mxu1 %vm178_vm2, %v2553_v56 }
 0x569   :  { %5326 = vmatprep.mubr.msk.f32.mxu1 %vm5631_vm1, %v5630_v10 }
 0x60f   :  { %v6023_v57 = vpop.f32.mrf.mxu0 }
 0x610   :  { %v6025_v58 = vpop.f32.mrf.mxu1 }
 0x611   :  { %v5263_v59 = vpop.f32.mrf.mxu0 }
 0x612   :  { %v5268_v60 = vpop.f32.mrf.mxu1 }
 0x613   :  { %v6027_v61 = vpop.f32.mrf.mxu0 }
 0x615   :  { %v5273_v62 = vpop.f32.mrf.mxu0 }
 0x617   :  { %v6029_v0 = vpop.f32.mrf.mxu0 }
 0x618   :  { %v6031_v2 = vpop.f32.mrf.mxu1 }
 0x619   :  { %v5283_v5 = vpop.f32.mrf.mxu0 }
 0x61a   :  { %v5278_v6 = vpop.f32.mrf.mxu1 }
 0x61b   :  { %v2236_v9 = vpop.f32.mrf.mxu0 }
 0x61c   :  { %v6033_v11 = vpop.f32.mrf.mxu1  ;;  %v2630_v12 = vmul.f32 0.35355338, %v2236_v9 }
 0x61d   :  { %v5293_v13 = vpop.f32.mrf.mxu0 }
 0x61e   :  { %v5288_v14 = vpop.f32.mrf.mxu1  ;;  %v2636_v16 = vsel %vm178_vm2, %v2630_v12, -inf }
 0x61f   :  { %2637 = vmax.xlane.f32.xlu0 %v2636_v16  ;;  %v2392_v18 = vpop.f32.mrf.mxu0 }
 0x620   :  { %v2314_v20 = vpop.f32.mrf.mxu1  ;;  %v2632_v24 = vmul.f32 0.35355338, %v2392_v18 }
 0x621   :  { %v2631_v25 = vmul.f32 0.35355338, %v2314_v20  ;;  %v5303_v26 = vpop.f32.mrf.mxu0 }
 0x622   :  { %v5298_v27 = vpop.f32.mrf.mxu1  ;;  %v2642_v28 = vsel %vm178_vm2, %v2632_v24, -inf }
 0x623   :  { %v2639_v29 = vsel %vm178_vm2, %v2631_v25, -inf  ;;  %2643 = vmax.xlane.f32.xlu0 %v2642_v28  ;;  %v2548_v30 = vpop.f32.mrf.mxu0 }
 0x624   :  { %2640 = vmax.xlane.f32.xlu1 %v2639_v29  ;;  %v2470_v31 = vpop.f32.mrf.mxu1  ;;  %v2634_v32 = vmul.f32 0.35355338, %v2548_v30 }
 0x625   :  { %v2633_v33 = vmul.f32 0.35355338, %v2470_v31  ;;  %v5313_v34 = vpop.f32.mrf.mxu0 }
 0x626   :  { %v5308_v35 = vpop.f32.mrf.mxu1  ;;  %v2648_v36 = vsel %vm178_vm2, %v2634_v32, -inf }
 0x627   :  { %v2645_v37 = vsel %vm178_vm2, %v2633_v33, -inf }
 0x628   :  { %v2626_v38 = vpop.f32.mrf.mxu1  ;;  %2646 = vmax.xlane.f32.xlu0 %v2645_v37  ;;  %2649 = vmax.xlane.f32.xlu1 %v2648_v36 }
 0x629   :  { %v2635_v39 = vmul.f32 0.35355338, %v2626_v38 }
 0x62a   :  { %v5318_v40 = vpop.f32.mrf.mxu1 }
 0x62b   :  { %v2651_v41 = vsel %vm178_vm2, %v2635_v39, -inf }
 0x62c   :  { %2652 = vmax.xlane.f32.xlu0 %v2651_v41 }
 0x639   :  { %2702 = vrot.lane.b32.xlu1 %v5761_v15, %s5639_s18 }
 0x63d   :  { %2854 = vrot.lane.b32.xlu1 %v5763_v17, %s5639_s18 }
 0x641   :  { %2930 = vrot.lane.b32.xlu1 %v5769_v21, %s5639_s18 }
 0x642   :  { %2778 = vrot.lane.b32.xlu0 %v5766_v19, %s5639_s18 }
 0x645   :  { %3082 = vrot.lane.b32.xlu1 %v5775_v23, %s5639_s18 }
 0x646   :  { %3006 = vrot.lane.b32.xlu0 %v5772_v22, %s5639_s18 }
 0x649   :  { %3238 = vrot.lane.b32.xlu1 %v5766_v19, %s5640_s19 }
 0x64a   :  { %3160 = vrot.lane.b32.xlu0 %v5761_v15, %s5640_s19 }
 0x64d   :  { %3236 = vrot.lane.b32.xlu1 %v5766_v19, %s5641_s20 }
 0x64e   :  { %3158 = vrot.lane.b32.xlu0 %v5761_v15, %s5641_s20 }
 0x651   :  { %3394 = vrot.lane.b32.xlu1 %v5769_v21, %s5640_s19 }
 0x652   :  { %3316 = vrot.lane.b32.xlu0 %v5763_v17, %s5640_s19 }
 0x6a8   :  { %v2638_v42 = vpop.xlane.xlu0 %2637 }
 0x6a9   :  { %v2654_v43 = vsub.f32 %v2630_v12, %v2638_v42 }
 0x6ab   :  { %v2660_v44 = vmul.f32 1.442695, %v2654_v43 }
 0x6ac   :  { %v2644_v45 = vpop.xlane.xlu0 %2643 }
 0x6ad   :  { %5540 = vpow2.f32 %v2660_v44  ;;  %v2641_v46 = vpop.xlane.xlu1 %2640  ;;  %v2656_v47 = vsub.f32 %v2632_v24, %v2644_v45 }
 0x6ae   :  { %v2655_v48 = vsub.f32 %v2631_v25, %v2641_v46 }
 0x6af   :  { %v2664_v49 = vmul.f32 1.442695, %v2656_v47 }
 0x6b0   :  { %v2662_v50 = vmul.f32 1.442695, %v2655_v48 }
 0x6b1   :  { %5542 = vpow2.f32 %v2664_v49  ;;  %v2650_v51 = vpop.xlane.xlu1 %2649  ;;  %v2647_v52 = vpop.xlane.xlu0 %2646 }
 0x6b2   :  { %5544 = vpow2.f32 %v2662_v50  ;;  %v2658_v53 = vsub.f32 %v2634_v32, %v2650_v51  ;;  %v2657_v54 = vsub.f32 %v2633_v33, %v2647_v52 }
 0x6b4   :  { %v2668_v55 = vmul.f32 1.442695, %v2658_v53  ;;  %v2666_v56 = vmul.f32 1.442695, %v2657_v54 }
 0x6b5   :  { %v2703_v59 = vpop.permute.xlu1 %2702  ;;  %v2653_v60 = vpop.xlane.xlu0 %2652 }
 0x6b6   :  { %5546 = vpow2.f32 %v2668_v55  ;;  %v2659_v62 = vsub.f32 %v2635_v39, %v2653_v60  ;;  %5320 = vmatpush3.msra.mxu0 %v2703_v59 }
 0x6b7   :  { %5548 = vpow2.f32 %v2666_v56  ;;  %5329 = vmatprep.subr.mxu0 %v5630_v10 }
 0x6b8   :  { %v2670_v5 = vmul.f32 1.442695, %v2659_v62 }
 0x6b9   :  { %v2779_v6 = vpop.permute.xlu0 %2778  ;;  %v2855_v29 = vpop.permute.xlu1 %2854 }
 0x6ba   :  { %v5541_v9 = vpop.eup %5540  ;;  %5550 = vpow2.f32 %v2670_v5  ;;  %5325 = vmatpush3.msra.mxu1 %v2779_v6 }
 0x6bb   :  { %v2672_v12 = vsel %vm178_vm2, %v5541_v9, 0.0  ;;  %5334 = vmatprep.subr.mxu1 %v5630_v10 }
 0x6bc   :  { %2673 = vadd.xlane.f32.xlu1 %v2672_v12 }
 0x6bd   :  { %v2931_v30 = vpop.permute.xlu1 %2930  ;;  %v3007_v32 = vpop.permute.xlu0 %3006 }
 0x6be   :  { %v5543_v13 = vpop.eup %5542 }
 0x6bf   :  { %v5545_v14 = vpop.eup %5544  ;;  %v2678_v16 = vsel %vm178_vm2, %v5543_v13, 0.0 }
 0x6c0   :  { %v2675_v18 = vsel %vm178_vm2, %v5545_v14, 0.0  ;;  %2679 = vadd.xlane.f32.xlu1 %v2678_v16 }
 0x6c1   :  { %2676 = vadd.xlane.f32.xlu0 %v2675_v18  ;;  %v3083_v31 = vpop.permute.xlu1 %3082  ;;  %v3161_v34 = vpop.permute.xlu0 %3160 }
 0x6c3   :  { %v5547_v20 = vpop.eup %5546 }
 0x6c4   :  { %v5549_v24 = vpop.eup %5548  ;;  %v2684_v25 = vsel %vm178_vm2, %v5547_v20, 0.0 }
 0x6c5   :  { %2685 = vadd.xlane.f32.xlu1 %v2684_v25  ;;  %v2681_v26 = vsel %vm178_vm2, %v5549_v24, 0.0  ;;  %v3239_v33 = vpop.permute.xlu1 %3238  ;;  %v3159_v36 = vpop.permute.xlu0 %3158 }
 0x6c6   :  { %2682 = vadd.xlane.f32.xlu0 %v2681_v26 }
 0x6c7   :  { %v5551_v27 = vpop.eup %5550 }
 0x6c8   :  { %v2687_v28 = vsel %vm178_vm2, %v5551_v27, 0.0 }
 0x6c9   :  { %v3237_v35 = vpop.permute.xlu1 %3236  ;;  %v3317_v39 = vpop.permute.xlu0 %3316 }
 0x6ca   :  { %2688 = vadd.xlane.f32.xlu0 %v2687_v28 }
 0x6cd   :  { %v3395_v37 = vpop.permute.xlu1 %3394 }
 0x6d6   :  { %3392 = vrot.lane.b32.xlu1 %v5769_v21, %s5641_s20 }
 0x6da   :  { %3550 = vrot.lane.b32.xlu1 %v5775_v23, %s5640_s19 }
 0x6de   :  { %3548 = vrot.lane.b32.xlu1 %v5775_v23, %s5641_s20 }
 0x6e0   :  { %3314 = vrot.lane.b32.xlu0 %v5763_v17, %s5641_s20 }
 0x6e4   :  { %3472 = vrot.lane.b32.xlu0 %v5772_v22, %s5640_s19 }
 0x6e8   :  { %3470 = vrot.lane.b32.xlu0 %v5772_v22, %s5641_s20 }
 0x745   :  { %v2674_v38 = vpop.xlane.xlu1 %2673 }
 0x746   :  { %5552 = vrcp.f32 %v2674_v38 }
 0x749   :  { %v2680_v40 = vpop.xlane.xlu1 %2679 }
 0x74a   :  { %5554 = vrcp.f32 %v2680_v40  ;;  %v2677_v41 = vpop.xlane.xlu0 %2676 }
 0x74b   :  { %5556 = vrcp.f32 %v2677_v41 }
 0x74e   :  { %v2686_v42 = vpop.xlane.xlu1 %2685 }
 0x74f   :  { %5558 = vrcp.f32 %v2686_v42  ;;  %v2683_v43 = vpop.xlane.xlu0 %2682 }
 0x750   :  { %5560 = vrcp.f32 %v2683_v43 }
 0x752   :  { %v3393_v60 = vpop.permute.xlu1 %3392 }
 0x753   :  { %v5553_v44 = vpop.eup %5552  ;;  %v2689_v45 = vpop.xlane.xlu0 %2688 }
 0x754   :  { %5562 = vrcp.f32 %v2689_v45  ;;  %v2696_v46 = vmul.f32 %v5553_v44, %v5541_v9 }
 0x756   :  { %5322 = vmatmul.mubr.msk.f32.vlgmr.msra.gmra.mxu0 %vm178_vm2, %v2696_v46  ;;  %v3551_v5 = vpop.permute.xlu1 %3550 }
 0x757   :  { %v5555_v47 = vpop.eup %5554  ;;  %5330 = vmatpush3.msra.mxu0 %v2855_v29  ;;  %5331 = vmatprep.mubr.msk.f32.mxu0 %vm5631_vm1, %v5630_v10  ;;  %v3315_v54 = vpop.permute.xlu0 %3314 }
 0x758   :  { %v5557_v48 = vpop.eup %5556  ;;  %5339 = vmatprep.subr.mxu0 %v5630_v10  ;;  %v2698_v49 = vmul.f32 %v5555_v47, %v5543_v13 }
 0x759   :  { %v2697_v50 = vmul.f32 %v5557_v48, %v5545_v14 }
 0x75a   :  { %5332 = vmatmul.mubr.msk.f32.vlgmr.msra.gmra.mxu0 %vm178_vm2, %v2698_v49  ;;  %v3549_v9 = vpop.permute.xlu1 %3548 }
 0x75b   :  { %5327 = vmatmul.mubr.msk.f32.vlgmr.msra.gmra.mxu1 %vm178_vm2, %v2697_v50  ;;  %5340 = vmatpush3.msra.mxu0 %v3007_v32  ;;  %v3473_v62 = vpop.permute.xlu0 %3472 }
 0x75c   :  { %v5559_v51 = vpop.eup %5558  ;;  %5335 = vmatpush3.msra.mxu1 %v2931_v30  ;;  %5336 = vmatprep.mubr.msk.f32.mxu1 %vm5631_vm1, %v5630_v10 }
 0x75d   :  { %v5561_v52 = vpop.eup %5560  ;;  %5341 = vmatprep.mubr.msk.f32.mxu0 %vm5631_vm1, %v5630_v10  ;;  %5344 = vmatprep.subr.mxu1 %v5630_v10  ;;  %v2700_v53 = vmul.f32 %v5559_v51, %v5547_v20 }
 0x75e   :  { %5349 = vmatprep.subr.mxu0 %v5630_v10  ;;  %v2699_v55 = vmul.f32 %v5561_v52, %v5549_v24 }
 0x75f   :  { %5342 = vmatmul.mubr.msk.f32.vlgmr.msra.gmra.mxu0 %vm178_vm2, %v2700_v53  ;;  %v3471_v6 = vpop.permute.xlu0 %3470 }
 0x760   :  { %5337 = vmatmul.mubr.msk.f32.vlgmr.msra.gmra.mxu1 %vm178_vm2, %v2699_v55  ;;  %5350 = vmatpush3.xpose.msk.msra.mxu0 %vm178_vm2, %v3161_v34 }
 0x761   :  { %v5563_v56 = vpop.eup %5562  ;;  %5345 = vmatpush3.msra.mxu1 %v3083_v31  ;;  %5346 = vmatprep.mubr.msk.f32.mxu1 %vm5631_vm1, %v5630_v10 }
 0x762   :  { %5351 = vmatprep.mubr.msk.f32.mxu0 %vm5631_vm1, %v5630_v10  ;;  %5354 = vmatprep.subr.mxu1 %v5630_v10  ;;  %v2701_v59 = vmul.f32 %v5563_v56, %v5551_v27 }
 0x763   :  { %5359 = vmatprep.subr.mxu0 %v5630_v10  ;;  %5352 = vmatmul.mubr.msk.f32.vlgmr.msra.gmra.mxu0 %vm178_vm2, %v3159_v36 }
 0x764   :  { %5347 = vmatmul.mubr.msk.f32.vlgmr.msra.gmra.mxu1 %vm178_vm2, %v2701_v59  ;;  %5360 = vmatpush3.xpose.msk.msra.mxu0 %vm178_vm2, %v3317_v39 }
 0x765   :  { %5355 = vmatpush3.xpose.msk.msra.mxu1 %vm178_vm2, %v3239_v33  ;;  %5356 = vmatprep.mubr.msk.f32.mxu1 %vm5631_vm1, %v5630_v10 }
 0x766   :  { %5361 = vmatprep.mubr.msk.f32.mxu0 %vm5631_vm1, %v5630_v10  ;;  %5364 = vmatprep.subr.mxu1 %v5630_v10 }
 0x767   :  { %5369 = vmatprep.subr.mxu0 %v5630_v10  ;;  %5362 = vmatmul.mubr.msk.f32.vlgmr.msra.gmra.mxu0 %vm178_vm2, %v3315_v54 }
 0x768   :  { %5357 = vmatmul.mubr.msk.f32.vlgmr.msra.gmra.mxu1 %vm178_vm2, %v3237_v35  ;;  %5370 = vmatpush3.xpose.msk.msra.mxu0 %vm178_vm2, %v3473_v62 }
 0x769   :  { %5365 = vmatpush3.xpose.msk.msra.mxu1 %vm178_vm2, %v3395_v37  ;;  %5366 = vmatprep.mubr.msk.f32.mxu1 %vm5631_vm1, %v5630_v10 }
 0x76a   :  { %5371 = vmatprep.mubr.msk.f32.mxu0 %vm5631_vm1, %v5630_v10  ;;  %5374 = vmatprep.subr.mxu1 %v5630_v10 }
 0x76b   :  { %5372 = vmatmul.mubr.msk.f32.vlgmr.msra.gmra.mxu0 %vm178_vm2, %v3471_v6  ;;  %5379 = vmatprep.subr.mxu0 %v5630_v10 }
 0x76c   :  { %5367 = vmatmul.mubr.msk.f32.vlgmr.msra.gmra.mxu1 %vm178_vm2, %v3393_v60  ;;  %5381 = vmatprep.mubr.msk.f32.mxu0 %vm5631_vm1, %v5630_v10 }
 0x76d   :  { %5375 = vmatpush3.xpose.msk.msra.mxu1 %vm178_vm2, %v3551_v5  ;;  %5376 = vmatprep.mubr.msk.f32.mxu1 %vm5631_vm1, %v5630_v10 }
 0x76e   :  { %5384 = vmatprep.subr.mxu1 %v5630_v10 }
 0x770   :  { %5377 = vmatmul.mubr.msk.f32.vlgmr.msra.gmra.mxu1 %vm178_vm2, %v3549_v9 }
 0x771   :  { %5386 = vmatprep.mubr.msk.f32.mxu1 %vm5631_vm1, %v5630_v10 }
 0x816   :  { %v6131_v12 = vpop.f32.mrf.mxu0 }
 0x818   :  { %v5323_v13 = vpop.f32.mrf.mxu0 }
 0x81a   :  { %v6133_v14 = vpop.f32.mrf.mxu0 }
 0x81b   :  { %v6135_v16 = vpop.f32.mrf.mxu1 }
 0x81c   :  { %v5333_v18 = vpop.f32.mrf.mxu0 }
 0x81d   :  { %v5328_v20 = vpop.f32.mrf.mxu1 }
 0x81f   :  { %v6137_v24 = vpop.f32.mrf.mxu0 }
 0x820   :  { %v6139_v25 = vpop.f32.mrf.mxu1 }
 0x821   :  { %v5343_v26 = vpop.f32.mrf.mxu0 }
 0x822   :  { %v5338_v27 = vpop.f32.mrf.mxu1 }
 0x823   :  { %v3232_v28 = vpop.f32.mrf.mxu0 }
 0x824   :  { %v6141_v29 = vpop.f32.mrf.mxu1  ;;  %v3626_v30 = vmul.f32 0.35355338, %v3232_v28 }
 0x825   :  { %v5353_v31 = vpop.f32.mrf.mxu0 }
 0x826   :  { %v5348_v32 = vpop.f32.mrf.mxu1  ;;  %v3632_v33 = vsel %vm178_vm2, %v3626_v30, -inf }
 0x827   :  { %3633 = vmax.xlane.f32.xlu0 %v3632_v33  ;;  %v3388_v34 = vpop.f32.mrf.mxu0 }
 0x828   :  { %v3310_v35 = vpop.f32.mrf.mxu1  ;;  %v3628_v36 = vmul.f32 0.35355338, %v3388_v34 }
 0x829   :  { %v3627_v37 = vmul.f32 0.35355338, %v3310_v35  ;;  %v5363_v38 = vpop.f32.mrf.mxu0 }
 0x82a   :  { %v5358_v39 = vpop.f32.mrf.mxu1  ;;  %v3638_v40 = vsel %vm178_vm2, %v3628_v36, -inf }
 0x82b   :  { %v3635_v41 = vsel %vm178_vm2, %v3627_v37, -inf  ;;  %3639 = vmax.xlane.f32.xlu0 %v3638_v40  ;;  %v3544_v42 = vpop.f32.mrf.mxu0 }
 0x82c   :  { %3636 = vmax.xlane.f32.xlu1 %v3635_v41  ;;  %v3466_v43 = vpop.f32.mrf.mxu1  ;;  %v3630_v44 = vmul.f32 0.35355338, %v3544_v42 }
 0x82d   :  { %v3629_v45 = vmul.f32 0.35355338, %v3466_v43  ;;  %v5373_v46 = vpop.f32.mrf.mxu0 }
 0x82e   :  { %v5368_v47 = vpop.f32.mrf.mxu1  ;;  %v3644_v48 = vsel %vm178_vm2, %v3630_v44, -inf }
 0x82f   :  { %v3641_v49 = vsel %vm178_vm2, %v3629_v45, -inf }
 0x830   :  { %v3622_v50 = vpop.f32.mrf.mxu1  ;;  %3642 = vmax.xlane.f32.xlu0 %v3641_v49  ;;  %3645 = vmax.xlane.f32.xlu1 %v3644_v48 }
 0x831   :  { %v3631_v51 = vmul.f32 0.35355338, %v3622_v50 }
 0x832   :  { %v5378_v52 = vpop.f32.mrf.mxu1 }
 0x833   :  { %v3647_v53 = vsel %vm178_vm2, %v3631_v51, -inf  ;;  %v4248_v52 = vld [vmem:[%s6436_s3 + $0x10] sm:$0xff] }
 0x834   :  { %3648 = vmax.xlane.f32.xlu0 %v3647_v53  ;;  %v4247_v53 = vld [vmem:[%s6436_s3 + $0x8] sm:$0xff] }
 0x841   :  { %3698 = vrot.lane.b32.xlu1 %v5761_v15, %s5642_s21 }
 0x845   :  { %3850 = vrot.lane.b32.xlu1 %v5763_v17, %s5642_s21 }
 0x849   :  { %3926 = vrot.lane.b32.xlu1 %v5769_v21, %s5642_s21 }
 0x84a   :  { %3774 = vrot.lane.b32.xlu0 %v5766_v19, %s5642_s21 }
 0x8b0   :  { %v3634_v54 = vpop.xlane.xlu0 %3633 }
 0x8b1   :  { %v3650_v55 = vsub.f32 %v3626_v30, %v3634_v54 }
 0x8b3   :  { %v3656_v56 = vmul.f32 1.442695, %v3650_v55 }
 0x8b4   :  { %v3640_v59 = vpop.xlane.xlu0 %3639 }
 0x8b5   :  { %5564 = vpow2.f32 %v3656_v56  ;;  %v3637_v60 = vpop.xlane.xlu1 %3636  ;;  %v3652_v62 = vsub.f32 %v3628_v36, %v3640_v59 }
 0x8b6   :  { %v3651_v5 = vsub.f32 %v3627_v37, %v3637_v60 }
 0x8b7   :  { %v3660_v6 = vmul.f32 1.442695, %v3652_v62 }
 0x8b8   :  { %v3658_v9 = vmul.f32 1.442695, %v3651_v5 }
 0x8b9   :  { %5566 = vpow2.f32 %v3660_v6  ;;  %v3646_v15 = vpop.xlane.xlu1 %3645  ;;  %v3643_v13 = vpop.xlane.xlu0 %3642 }
 0x8ba   :  { %5568 = vpow2.f32 %v3658_v9  ;;  %v3654_v17 = vsub.f32 %v3630_v44, %v3646_v15  ;;  %v3653_v18 = vsub.f32 %v3629_v45, %v3643_v13 }
 0x8bc   :  { %v3664_v21 = vmul.f32 1.442695, %v3654_v17  ;;  %v3662_v20 = vmul.f32 1.442695, %v3653_v18 }
 0x8bd   :  { %v3699_v26 = vpop.permute.xlu1 %3698  ;;  %v3649_v19 = vpop.xlane.xlu0 %3648 }
 0x8be   :  { %5570 = vpow2.f32 %v3664_v21  ;;  %v3655_v27 = vsub.f32 %v3631_v51, %v3649_v19  ;;  %5380 = vmatpush3.msra.mxu0 %v3699_v26  ;;  %v4249_v51 = vld [vmem:[%s6436_s3 + $0x18] sm:$0xff] }
 0x8bf   :  { %5572 = vpow2.f32 %v3662_v20  ;;  %5389 = vmatprep.subr.mxu0 %v5630_v10 }
 0x8c0   :  { %v3666_v28 = vmul.f32 1.442695, %v3655_v27 }
 0x8c1   :  { %v3775_v30 = vpop.permute.xlu0 %3774 }
 0x8c2   :  { %v5565_v31 = vpop.eup %5564  ;;  %5574 = vpow2.f32 %v3666_v28  ;;  %5385 = vmatpush3.msra.mxu1 %v3775_v30 }
 0x8c3   :  { %v3668_v32 = vsel %vm178_vm2, %v5565_v31, 0.0  ;;  %5394 = vmatprep.subr.mxu1 %v5630_v10 }
 0x8c4   :  { %3669 = vadd.xlane.f32.xlu1 %v3668_v32 }
 0x8c6   :  { %v5567_v33 = vpop.eup %5566 }
 0x8c7   :  { %v5569_v34 = vpop.eup %5568  ;;  %v3674_v35 = vsel %vm178_vm2, %v5567_v33, 0.0 }
 0x8c8   :  { %v3671_v36 = vsel %vm178_vm2, %v5569_v34, 0.0  ;;  %3675 = vadd.xlane.f32.xlu1 %v3674_v35 }
 0x8c9   :  { %3672 = vadd.xlane.f32.xlu0 %v3671_v36 }
 0x8cb   :  { %v5571_v37 = vpop.eup %5570 }
 0x8cc   :  { %v5573_v38 = vpop.eup %5572  ;;  %v3680_v39 = vsel %vm178_vm2, %v5571_v37, 0.0 }
 0x8cd   :  { %3681 = vadd.xlane.f32.xlu1 %v3680_v39  ;;  %v3677_v40 = vsel %vm178_vm2, %v5573_v38, 0.0 }
 0x8ce   :  { %3678 = vadd.xlane.f32.xlu0 %v3677_v40 }
 0x8cf   :  { %v5575_v41 = vpop.eup %5574 }
 0x8d0   :  { %v3683_v42 = vsel %vm178_vm2, %v5575_v41, 0.0 }
 0x8d2   :  { %3684 = vadd.xlane.f32.xlu0 %v3683_v42 }
 0x8de   :  { %4078 = vrot.lane.b32.xlu1 %v5775_v23, %s5642_s21 }
 0x8e2   :  { %4162 = vrot.lane.b32.xlu1 %v6025_v58, %s5643_s1 }
 0x8e6   :  { %4186 = vrot.lane.b32.xlu1 %v6135_v16, %s5644_s22 }
 0x8e8   :  { %4002 = vrot.lane.b32.xlu0 %v5772_v22, %s5642_s21  ;;  %v3851_v22 = vpop.permute.xlu1 %3850 }
 0x8ea   :  { %4166 = vrot.lane.b32.xlu1 %v6031_v2, %s5643_s1 }
 0x8ec   :  { %4160 = vrot.lane.b32.xlu0 %v6023_v57, %s5643_s1  ;;  %v3927_v23 = vpop.permute.xlu1 %3926 }
 0x8ee   :  { %4190 = vrot.lane.b32.xlu1 %v6139_v25, %s5644_s22 }
 0x8f0   :  { %4184 = vrot.lane.b32.xlu0 %v6131_v12, %s5644_s22 }
 0x8f2   :  { %4170 = vrot.lane.b32.xlu1 %v6033_v11, %s5643_s1 }
 0x8f4   :  { %4164 = vrot.lane.b32.xlu0 %v6027_v61, %s5643_s1 }
 0x8f6   :  { %4194 = vrot.lane.b32.xlu1 %v6141_v29, %s5644_s22 }
 0x8f8   :  { %4188 = vrot.lane.b32.xlu0 %v6133_v14, %s5644_s22 }
 0x8fc   :  { %4168 = vrot.lane.b32.xlu0 %v6029_v0, %s5643_s1 }
 0x900   :  { %4192 = vrot.lane.b32.xlu0 %v6137_v24, %s5644_s22 }
 0x94d   :  { %v3670_v58 = vpop.xlane.xlu1 %3669 }
 0x94e   :  { %5576 = vrcp.f32 %v3670_v58 }
 0x951   :  { %v3676_v57 = vpop.xlane.xlu1 %3675 }
 0x952   :  { %5578 = vrcp.f32 %v3676_v57  ;;  %v3673_v2 = vpop.xlane.xlu0 %3672 }
 0x953   :  { %5580 = vrcp.f32 %v3673_v2 }
 0x956   :  { %v3682_v12 = vpop.xlane.xlu1 %3681 }
 0x957   :  { %5582 = vrcp.f32 %v3682_v12  ;;  %v3679_v11 = vpop.xlane.xlu0 %3678 }
 0x958   :  { %5584 = vrcp.f32 %v3679_v11 }
 0x95a   :  { %v4079_v48 = vpop.permute.xlu1 %4078 }
 0x95b   :  { %v5577_v61 = vpop.eup %5576  ;;  %v3685_v16 = vpop.xlane.xlu0 %3684 }
 0x95c   :  { %5586 = vrcp.f32 %v3685_v16  ;;  %v3692_v14 = vmul.f32 %v5577_v61, %v5565_v31 }
 0x95e   :  { %5382 = vmatmul.mubr.msk.f32.vlgmr.msra.gmra.mxu0 %vm178_vm2, %v3692_v14  ;;  %v4163_v21 = vpop.permute.xlu1 %4162 }
 0x95f   :  { %v5579_v0 = vpop.eup %5578  ;;  %5390 = vmatpush3.msra.mxu0 %v3851_v22  ;;  %5391 = vmatprep.mubr.msk.f32.mxu0 %vm5631_vm1, %v5630_v10  ;;  %v4003_v43 = vpop.permute.xlu0 %4002  ;;  %v4227_v40 = vsel %vm178_vm2, %v5917_v1, %v4163_v21 }
 0x960   :  { %v5581_v24 = vpop.eup %5580  ;;  %5399 = vmatprep.subr.mxu0 %v5630_v10  ;;  %v3694_v25 = vmul.f32 %v5579_v0, %v5567_v33 }
 0x961   :  { %v3693_v29 = vmul.f32 %v5581_v24, %v5569_v34  ;;  %v4987_v24 = vld [vmem:[%s6437_s4] ss:$0 sm:$0xff] }
 0x962   :  { %5392 = vmatmul.mubr.msk.f32.vlgmr.msra.gmra.mxu0 %vm178_vm2, %v3694_v25  ;;  %v4187_v26 = vpop.permute.xlu1 %4186 }
 0x963   :  { %5387 = vmatmul.mubr.msk.f32.vlgmr.msra.gmra.mxu1 %vm178_vm2, %v3693_v29  ;;  %5400 = vmatpush3.msra.mxu0 %v4003_v43  ;;  %v4161_v18 = vpop.permute.xlu0 %4160  ;;  %v4234_v22 = vsel %vm4232_vm4, %v4227_v40, %v4187_v26 }
 0x964   :  { %v5583_v44 = vpop.eup %5582  ;;  %5395 = vmatpush3.msra.mxu1 %v3927_v23  ;;  %5401 = vmatprep.mubr.msk.f32.mxu0 %vm5631_vm1, %v5630_v10  ;;  %v4226_v34 = vsel %vm178_vm2, %v5915_v63, %v4161_v18 }
 0x965   :  { %v5585_v45 = vpop.eup %5584  ;;  %5396 = vmatprep.mubr.msk.f32.mxu1 %vm5631_vm1, %v5630_v10  ;;  %5404 = vmatprep.subr.mxu1 %v5630_v10  ;;  %v3696_v46 = vmul.f32 %v5583_v44, %v5571_v37 }
 0x966   :  { %v3695_v47 = vmul.f32 %v5585_v45, %v5573_v38  ;;  %5409 = vmatprep.subr.mxu0 %v4249_v51  ;;  %v4167_v27 = vpop.permute.xlu1 %4166 }
 0x967   :  { %5402 = vmatmul.mubr.msk.f32.vlgmr.msra.gmra.mxu0 %vm178_vm2, %v3696_v46  ;;  %v4185_v20 = vpop.permute.xlu0 %4184  ;;  %v4229_v1 = vsel %vm178_vm2, %v5921_v4, %v4167_v27  ;;  %v5625_v46 = vld [vmem:[%s6434_s0] sm:$0xff] }
 0x968   :  { %5397 = vmatmul.mubr.msk.f32.vlgmr.msra.gmra.mxu1 %vm178_vm2, %v3695_v47  ;;  %5410 = vmatpush3.msra.mxu0 %v4249_v51  ;;  %v4233_v35 = vsel %vm4232_vm4, %v4226_v34, %v4185_v20 }
 0x969   :  { %v5587_v49 = vpop.eup %5586  ;;  %5405 = vmatpush3.msra.mxu1 %v4079_v48  ;;  %5406 = vmatprep.mubr.msk.f32.mxu1 %vm5631_vm1, %v5630_v10  ;;  %v4246_v10 = vld [vmem:[%s6436_s3] sm:$0xff] }
 0x96a   :  { %v3697_v50 = vmul.f32 %v5587_v49, %v5575_v41  ;;  %5411 = vmatprep.subr.mxu0 %v4248_v52  ;;  %v4191_v30 = vpop.permute.xlu1 %4190 }
 0x96b   :  { %5412 = vmatpush3.msra.mxu0 %v4248_v52  ;;  %v4165_v19 = vpop.permute.xlu0 %4164  ;;  %v4236_v12 = vsel %vm4232_vm4, %v4229_v1, %v4191_v30 }
 0x96c   :  { %5407 = vmatmul.mubr.msk.f32.vlgmr.msra.gmra.mxu1 %vm178_vm2, %v3697_v50  ;;  %5413 = vmatprep.subr.mxu0 %v4247_v53  ;;  %v4228_v39 = vsel %vm178_vm2, %v5919_v3, %v4165_v19 }
 0x96d   :  { %5414 = vmatpush3.msra.mxu0 %v4247_v53 }
 0x96e   :  { %5415 = vmatprep.subr.mxu0 %v4246_v10  ;;  %v4171_v32 = vpop.permute.xlu1 %4170 }
 0x96f   :  { %5416 = vmatpush3.msra.mxu0 %v4246_v10  ;;  %v4189_v28 = vpop.permute.xlu0 %4188 }
 0x970   :  { %v4235_v41 = vsel %vm4232_vm4, %v4228_v39, %v4189_v28 }
 0x972   :  { %v4195_v37 = vpop.permute.xlu1 %4194 }
 0x973   :  { %v4169_v31 = vpop.permute.xlu0 %4168 }
 0x974   :  { %v4230_v57 = vsel %vm178_vm2, %v5923_v7, %v4169_v31  ;;  %v4231_v7 = vsel %vm178_vm2, %v5925_v8, %v4171_v32  ;;  %v5624_v8 = vld [vmem:[%s6434_s0 + $0x8] sm:$0xff] }
 0x975   :  { %v4238_v14 = vsel %vm4232_vm4, %v4231_v7, %v4195_v37 }
 0x977   :  { %v4193_v33 = vpop.permute.xlu0 %4192 }
 0x978   :  { %v4237_v3 = vsel %vm4232_vm4, %v4230_v57, %v4193_v33 }
 0xa1e   :  { %v3770_v54 = vpop.f32.mrf.mxu0 }
 0xa1f   :  { %4208 = vrot.lane.b32.xlu0 %v3770_v54, %s5645_s30  ;;  %v5626_v54 = vld [vmem:[%s6434_s0 + $0x10] sm:$0xff] }
 0xa20   :  { %v5383_v55 = vpop.f32.mrf.mxu0 }
 0xa22   :  { %v3922_v56 = vpop.f32.mrf.mxu0 }
 0xa23   :  { %v3846_v59 = vpop.f32.mrf.mxu1  ;;  %4212 = vrot.lane.b32.xlu0 %v3922_v56, %s5645_s30 }
 0xa24   :  { %4210 = vrot.lane.b32.xlu1 %v3846_v59, %s5645_s30  ;;  %v5393_v60 = vpop.f32.mrf.mxu0  ;;  %v5627_v59 = vld [vmem:[%s6434_s0 + $0x18] sm:$0xff] }
 0xa25   :  { %v5388_v62 = vpop.f32.mrf.mxu1 }
 0xa27   :  { %v4074_v5 = vpop.f32.mrf.mxu0 }
 0xa28   :  { %v3998_v6 = vpop.f32.mrf.mxu1  ;;  %4216 = vrot.lane.b32.xlu0 %v4074_v5, %s5645_s30 }
 0xa29   :  { %4214 = vrot.lane.b32.xlu1 %v3998_v6, %s5645_s30  ;;  %v5403_v9 = vpop.f32.mrf.mxu0 }
 0xa2a   :  { %v5398_v15 = vpop.f32.mrf.mxu1  ;;  %v5628_v9 = vld [vmem:[%s6434_s0 + $0x20] sm:$0xff] }
 0xa2c   :  { %v4150_v13 = vpop.f32.mrf.mxu1 }
 0xa2d   :  { %4218 = vrot.lane.b32.xlu1 %v4150_v13, %s5645_s30  ;;  %v5629_v13 = vld [vmem:[%s6434_s0 + $0x28] sm:$0xff] }
 0xa2e   :  { %v5408_v17 = vpop.f32.mrf.mxu1 }
 0xa91   :  { %v4209_v36 = vpop.permute.xlu0 %4208 }
 0xa92   :  { %v4240_v38 = vsel %vm4239_vm3, %v4233_v35, %v4209_v36 }
 0xa93   :  { %5417 = vmatprep.mubr.msk.f32.mxu0 %vm61_vm0, %v4240_v38 }
 0xa95   :  { %v4213_v42 = vpop.permute.xlu0 %4212 }
 0xa96   :  { %v4211_v63 = vpop.permute.xlu1 %4210  ;;  %v4242_v23 = vsel %vm4239_vm3, %v4235_v41, %v4213_v42 }
 0xa97   :  { %v4241_v58 = vsel %vm4239_vm3, %v4234_v22, %v4211_v63 }
 0xa98   :  { %5418 = vmatmul.mubr.msk.f32.vlgmr.msra.gmra.mxu0 %vm61_vm0, %v4241_v58 }
 0xa99   :  { %5420 = vmatprep.mubr.msk.f32.mxu0 %vm61_vm0, %v4242_v23 }
 0xa9a   :  { %v4217_v2 = vpop.permute.xlu0 %4216 }
 0xa9b   :  { %v4215_v11 = vpop.permute.xlu1 %4214  ;;  %v4244_v61 = vsel %vm4239_vm3, %v4237_v3, %v4217_v2 }
 0xa9c   :  { %v4243_v16 = vsel %vm4239_vm3, %v4236_v12, %v4215_v11 }
 0xa9d   :  { %5421 = vmatmul.mubr.msk.f32.gmra.mxu0 %vm61_vm0, %v4243_v16 }
 0xa9e   :  { %5423 = vmatprep.mubr.msk.f32.mxu0 %vm61_vm0, %v4244_v61 }
 0xa9f   :  { %v4219_v4 = vpop.permute.xlu1 %4218 }
 0xaa0   :  { %v4245_v0 = vsel %vm4239_vm3, %v4238_v14, %v4219_v4  ;;  %v4484_v14 = vld [vmem:[%s6438_s7 + $0x18] sm:$0xff]  ;;  %v4483_v4 = vld [vmem:[%s6438_s7 + $0x10] sm:$0xff] }
 0xaa1   :  { %5424 = vmatmul.mubr.msk.f32.gmra.mxu0 %vm61_vm0, %v4245_v0  ;;  %5426 = vmatprep.subr.mxu1 %v4484_v14  ;;  %v4482_v0 = vld [vmem:[%s6438_s7 + $0x8] sm:$0xff] }
 0xaa2   :  { %5427 = vmatpush3.msra.mxu1 %v4484_v14 }
 0xaa3   :  { %5428 = vmatprep.subr.mxu1 %v4483_v4 }
 0xaa4   :  { %5429 = vmatpush3.msra.mxu1 %v4483_v4 }
 0xaa5   :  { %5430 = vmatprep.subr.mxu1 %v4482_v0 }
 0xaa6   :  { %5431 = vmatpush3.msra.mxu1 %v4482_v0 }
 0xb58   :  { %v5419_v25 = vpop.f32.mrf.mxu0 }
 0xb59   :  { %v4347_v29 = vadd.f32 %v5419_v25, %v4987_v24 }
 0xb5a   :  { %v4341_v43 = vpop.f32.mrf.mxu0 }
 0xb5b   :  { %v4371_v44 = vadd.f32 %v5624_v8, %v4347_v29  ;;  %v4342_v45 = vadd.f32 %v4987_v24, %v4341_v43 }
 0xb5d   :  { %v4370_v47 = vadd.f32 %v5625_v46, %v4342_v45  ;;  %v5422_v48 = vpop.f32.mrf.mxu0  ;;  %v4381_v49 = vsel %vm61_vm0, %v4371_v44, 0.0 }
 0xb5e   :  { %4382 = vadd.xlane.f32.xlu1 %v4381_v49  ;;  %v4357_v52 = vadd.f32 %v5422_v48, %v4987_v24 }
 0xb5f   :  { %v4351_v50 = vpop.f32.mrf.mxu0  ;;  %v4378_v51 = vsel %vm61_vm0, %v4370_v47, 0.0 }
 0xb60   :  { %v4352_v53 = vadd.f32 %v4987_v24, %v4351_v50  ;;  %4379 = vadd.xlane.f32.xlu0 %v4378_v51  ;;  %v4373_v60 = vadd.f32 %v5627_v59, %v4357_v52 }
 0xb61   :  { %v5425_v10 = vpop.f32.mrf.mxu0 }
 0xb62   :  { %v4372_v55 = vadd.f32 %v5626_v54, %v4352_v53  ;;  %v4367_v62 = vadd.f32 %v5425_v10, %v4987_v24  ;;  %v4387_v18 = vsel %vm61_vm0, %v4373_v60, 0.0 }
 0xb63   :  { %v4361_v56 = vpop.f32.mrf.mxu0 }
 0xb64   :  { %v4362_v5 = vadd.f32 %v4987_v24, %v4361_v56  ;;  %v4384_v6 = vsel %vm61_vm0, %v4372_v55, 0.0  ;;  %v4375_v17 = vadd.f32 %v5629_v13, %v4367_v62  ;;  %v4481_v24 = vld [vmem:[%s6438_s7] sm:$0xff] }
 0xb65   :  { %4385 = vadd.xlane.f32.xlu0 %v4384_v6  ;;  %5432 = vmatprep.subr.mxu1 %v4481_v24  ;;  %v4994_v62 = vld [vmem:[%s6439_s5] ss:$0 sm:$0xff] }
 0xb66   :  { %v4374_v15 = vadd.f32 %v5628_v9, %v4362_v5  ;;  %v4393_v20 = vsel %vm61_vm0, %v4375_v17, 0.0  ;;  %5433 = vmatpush3.msra.mxu1 %v4481_v24 }
 0xb68   :  { %v4390_v21 = vsel %vm61_vm0, %v4374_v15, 0.0 }
 0xb69   :  { %4388 = vadd.xlane.f32.xlu0 %v4387_v18  ;;  %4391 = vadd.xlane.f32.xlu1 %v4390_v21 }
 0xb6d   :  { %4394 = vadd.xlane.f32.xlu0 %v4393_v20 }
 0xbe7   :  { %v4383_v26 = vpop.xlane.xlu1 %4382 }
 0xbe8   :  { %v4398_v19 = vmul.f32 0.03125, %v4383_v26 }
 0xbe9   :  { %v4380_v27 = vpop.xlane.xlu0 %4379 }
 0xbea   :  { %v6266_v28 = vsub.f32 %v4371_v44, %v4398_v19  ;;  %v4397_v30 = vmul.f32 0.03125, %v4380_v27 }
 0xbec   :  { %v6268_v31 = vsub.f32 %v4370_v47, %v4397_v30  ;;  %v4410_v32 = vmul.f32 %v6266_v28, %v6266_v28 }
 0xbee   :  { %v4386_v33 = vpop.xlane.xlu0 %4385  ;;  %v4418_v34 = vsel %vm61_vm0, %v4410_v32, 0.0  ;;  %v4409_v35 = vmul.f32 %v6268_v31, %v6268_v31 }
 0xbef   :  { %v4399_v36 = vmul.f32 0.03125, %v4386_v33  ;;  %4419 = vadd.xlane.f32.xlu0 %v4418_v34 }
 0xbf0   :  { %v4415_v37 = vsel %vm61_vm0, %v4409_v35, 0.0 }
 0xbf1   :  { %v6276_v38 = vsub.f32 %v4372_v55, %v4399_v36  ;;  %4416 = vadd.xlane.f32.xlu1 %v4415_v37 }
 0xbf2   :  { %v4392_v39 = vpop.xlane.xlu1 %4391  ;;  %v4389_v40 = vpop.xlane.xlu0 %4388 }
 0xbf3   :  { %v4401_v41 = vmul.f32 0.03125, %v4392_v39  ;;  %v4400_v42 = vmul.f32 0.03125, %v4389_v40  ;;  %v4411_v22 = vmul.f32 %v6276_v38, %v6276_v38  ;;  %v4666_v40 = vld [vmem:[%s6441_s9 + $0x38] sm:$0xff] }
 0xbf4   :  { %5443 = vmatprep.subr.mxu0 %v4666_v40 }
 0xbf5   :  { %v6280_v63 = vsub.f32 %v4374_v15, %v4401_v41  ;;  %v6282_v23 = vsub.f32 %v4373_v60, %v4400_v42  ;;  %v4421_v58 = vsel %vm61_vm0, %v4411_v22, 0.0  ;;  %v4995_v15 = vld [vmem:[%s6440_s6] ss:$0 sm:$0xff]  ;;  %5444 = vmatpush3.msra.mxu0 %v4666_v40  ;;  %v4665_v41 = vld [vmem:[%s6441_s9 + $0x30] sm:$0xff]  ;;  %v4664_v42 = vld [vmem:[%s6441_s9 + $0x28] sm:$0xff] }
 0xbf6   :  { %4422 = vadd.xlane.f32.xlu1 %v4421_v58  ;;  %v4395_v57 = vpop.xlane.xlu0 %4394  ;;  %5445 = vmatprep.subr.mxu0 %v4665_v41  ;;  %v4663_v22 = vld [vmem:[%s6441_s9 + $0x20] sm:$0xff]  ;;  %v4660_v58 = vld [vmem:[%s6441_s9 + $0x8] sm:$0xff] }
 0xbf7   :  { %v4402_v1 = vmul.f32 0.03125, %v4395_v57  ;;  %v4413_v3 = vmul.f32 %v6280_v63, %v6280_v63  ;;  %v4412_v2 = vmul.f32 %v6282_v23, %v6282_v23  ;;  %5446 = vmatpush3.msra.mxu0 %v4665_v41  ;;  %v4659_v57 = vld [vmem:[%s6441_s9] sm:$0xff] }
 0xbf8   :  { %5447 = vmatprep.subr.mxu0 %v4664_v42 }
 0xbf9   :  { %v6289_v12 = vsub.f32 %v4375_v17, %v4402_v1  ;;  %v4427_v11 = vsel %vm61_vm0, %v4413_v3, 0.0  ;;  %v4424_v61 = vsel %vm61_vm0, %v4412_v2, 0.0  ;;  %5448 = vmatpush3.msra.mxu0 %v4664_v42  ;;  %v4996_v1 = vld [vmem:[%s6442_s8] ss:$0 sm:$0xff] }
 0xbfa   :  { %4428 = vadd.xlane.f32.xlu1 %v4427_v11  ;;  %4425 = vadd.xlane.f32.xlu0 %v4424_v61 }
 0xbfb   :  { %v4414_v16 = vmul.f32 %v6289_v12, %v6289_v12  ;;  %5449 = vmatprep.subr.mxu0 %v4663_v22 }
 0xbfc   :  { %5450 = vmatpush3.msra.mxu0 %v4663_v22 }
 0xbfd   :  { %v4430_v7 = vsel %vm61_vm0, %v4414_v16, 0.0 }
 0xbfe   :  { %4431 = vadd.xlane.f32.xlu0 %v4430_v7 }
 0xc78   :  { %v4420_v25 = vpop.xlane.xlu0 %4419 }
 0xc79   :  { %v4434_v29 = vmul.f32 0.03125, %v4420_v25 }
 0xc7a   :  { %v4417_v43 = vpop.xlane.xlu1 %4416 }
 0xc7b   :  { %v4440_v8 = vadd.f32 1e-12, %v4434_v29  ;;  %v4433_v44 = vmul.f32 0.03125, %v4417_v43 }
 0xc7d   :  { %5588 = vrsqrt.f32 %v4440_v8  ;;  %v4439_v45 = vadd.f32 1e-12, %v4433_v44 }
 0xc7f   :  { %5590 = vrsqrt.f32 %v4439_v45  ;;  %v4423_v46 = vpop.xlane.xlu1 %4422 }
 0xc80   :  { %v4435_v47 = vmul.f32 0.03125, %v4423_v46 }
 0xc82   :  { %v4441_v48 = vadd.f32 1e-12, %v4435_v47 }
 0xc83   :  { %v4429_v49 = vpop.xlane.xlu1 %4428  ;;  %v4426_v50 = vpop.xlane.xlu0 %4425 }
 0xc84   :  { %5592 = vrsqrt.f32 %v4441_v48  ;;  %v4437_v51 = vmul.f32 0.03125, %v4429_v49  ;;  %v4436_v52 = vmul.f32 0.03125, %v4426_v50 }
 0xc86   :  { %v4443_v53 = vadd.f32 1e-12, %v4437_v51  ;;  %v4442_v10 = vadd.f32 1e-12, %v4436_v52 }
 0xc87   :  { %v4432_v54 = vpop.xlane.xlu0 %4431 }
 0xc88   :  { %5594 = vrsqrt.f32 %v4443_v53  ;;  %v4438_v55 = vmul.f32 0.03125, %v4432_v54 }
 0xc89   :  { %5596 = vrsqrt.f32 %v4442_v10 }
 0xc8a   :  { %v5589_v56 = vpop.eup %5588  ;;  %v4444_v59 = vadd.f32 1e-12, %v4438_v55 }
 0xc8b   :  { %v4452_v60 = vmul.f32 %v5589_v56, %v6266_v28 }
 0xc8c   :  { %v5591_v5 = vpop.eup %5590  ;;  %5598 = vrsqrt.f32 %v4444_v59 }
 0xc8d   :  { %v4451_v6 = vmul.f32 %v5591_v5, %v6268_v31  ;;  %v4464_v9 = vmul.f32 %v4994_v62, %v4452_v60 }
 0xc8f   :  { %v4463_v13 = vmul.f32 %v4994_v62, %v4451_v6  ;;  %v6318_v21 = vadd.f32 %v4995_v15, %v4464_v9 }
 0xc91   :  { %v5593_v17 = vpop.eup %5592  ;;  %v6316_v18 = vadd.f32 %v4995_v15, %v4463_v13 }
 0xc92   :  { %v4453_v20 = vmul.f32 %v5593_v17, %v6276_v38 }
 0xc93   :  { %5434 = vmatprep.mubr.msk.f32.mxu1 %vm61_vm0, %v6316_v18 }
 0xc94   :  { %5435 = vmatmul.mubr.msk.f32.vlgmr.msra.gmra.mxu1 %vm61_vm0, %v6318_v21  ;;  %v4465_v26 = vmul.f32 %v4994_v62, %v4453_v20 }
 0xc95   :  { %v5595_v19 = vpop.eup %5594 }
 0xc96   :  { %v5597_v27 = vpop.eup %5596  ;;  %v6325_v28 = vadd.f32 %v4995_v15, %v4465_v26  ;;  %v4455_v30 = vmul.f32 %v5595_v19, %v6280_v63  ;;  %v4662_v63 = vld [vmem:[%s6441_s9 + $0x18] sm:$0xff] }
 0xc97   :  { %v4454_v31 = vmul.f32 %v5597_v27, %v6282_v23  ;;  %5451 = vmatprep.subr.mxu0 %v4662_v63  ;;  %v4661_v23 = vld [vmem:[%s6441_s9 + $0x10] sm:$0xff] }
 0xc98   :  { %5437 = vmatprep.mubr.msk.f32.mxu1 %vm61_vm0, %v6325_v28  ;;  %v4467_v32 = vmul.f32 %v4994_v62, %v4455_v30  ;;  %5452 = vmatpush3.msra.mxu0 %v4662_v63 }
 0xc99   :  { %v5599_v33 = vpop.eup %5598  ;;  %v4466_v34 = vmul.f32 %v4994_v62, %v4454_v31  ;;  %5453 = vmatprep.subr.mxu0 %v4661_v23 }
 0xc9a   :  { %v6331_v35 = vadd.f32 %v4995_v15, %v4467_v32  ;;  %v4456_v36 = vmul.f32 %v5599_v33, %v6289_v12  ;;  %5454 = vmatpush3.msra.mxu0 %v4661_v23 }
 0xc9b   :  { %v6334_v37 = vadd.f32 %v4995_v15, %v4466_v34  ;;  %5455 = vmatprep.subr.mxu0 %v4660_v58 }
 0xc9c   :  { %v4468_v38 = vmul.f32 %v4994_v62, %v4456_v36  ;;  %5456 = vmatpush3.msra.mxu0 %v4660_v58 }
 0xc9d   :  { %5438 = vmatmul.mubr.msk.f32.gmra.mxu1 %vm61_vm0, %v6334_v37  ;;  %5457 = vmatprep.subr.mxu0 %v4659_v57 }
 0xc9e   :  { %5440 = vmatprep.mubr.msk.f32.mxu1 %vm61_vm0, %v6331_v35  ;;  %v6340_v39 = vadd.f32 %v4995_v15, %v4468_v38  ;;  %5458 = vmatpush3.msra.mxu0 %v4659_v57 }
 0xca1   :  { %5441 = vmatmul.mubr.msk.f32.gmra.mxu1 %vm61_vm0, %v6340_v39 }
 0xd54   :  { %v5436_v3 = vpop.f32.mrf.mxu1 }
 0xd55   :  { %v4582_v2 = vadd.f32 %v5436_v3, %v4996_v1 }
 0xd56   :  { %v4576_v12 = vpop.f32.mrf.mxu1 }
 0xd57   :  { %v4606_v11 = vmul.f32 %v4582_v2, %v4582_v2  ;;  %v4577_v61 = vadd.f32 %v4996_v1, %v4576_v12 }
 0xd59   :  { %v4612_v16 = vmul.f32 %v4606_v11, %v4582_v2  ;;  %v4605_v7 = vmul.f32 %v4577_v61, %v4577_v61 }
 0xd5b   :  { %v4618_v14 = vmul.f32 0.044715, %v4612_v16  ;;  %v4611_v4 = vmul.f32 %v4605_v7, %v4577_v61 }
 0xd5d   :  { %v4624_v0 = vadd.f32 %v4618_v14, %v4582_v2  ;;  %v4617_v24 = vmul.f32 0.044715, %v4611_v4  ;;  %v5439_v25 = vpop.f32.mrf.mxu1  ;;  %v5003_v4 = vld [vmem:[%s6443_s10] ss:$0 sm:$0xff] }
 0xd5e   :  { %v4592_v29 = vadd.f32 %v5439_v25, %v4996_v1 }
 0xd5f   :  { %v4630_v43 = vmul.f32 0.7978846, %v4624_v0  ;;  %v4623_v8 = vadd.f32 %v4617_v24, %v4577_v61  ;;  %v4586_v44 = vpop.f32.mrf.mxu1 }
 0xd60   :  { %v4608_v45 = vmul.f32 %v4592_v29, %v4592_v29  ;;  %v4587_v46 = vadd.f32 %v4996_v1, %v4586_v44 }
 0xd61   :  { %5600 = vtanh.f32 %v4630_v43  ;;  %v4629_v47 = vmul.f32 0.7978846, %v4623_v8  ;;  %v5442_v48 = vpop.f32.mrf.mxu1 }
 0xd62   :  { %v4614_v49 = vmul.f32 %v4608_v45, %v4592_v29  ;;  %v4607_v50 = vmul.f32 %v4587_v46, %v4587_v46  ;;  %v4602_v51 = vadd.f32 %v5442_v48, %v4996_v1 }
 0xd63   :  { %5602 = vtanh.f32 %v4629_v47  ;;  %v4596_v52 = vpop.f32.mrf.mxu1 }
 0xd64   :  { %v4620_v53 = vmul.f32 0.044715, %v4614_v49  ;;  %v4613_v10 = vmul.f32 %v4607_v50, %v4587_v46  ;;  %v4610_v54 = vmul.f32 %v4602_v51, %v4602_v51  ;;  %v4597_v55 = vadd.f32 %v4996_v1, %v4596_v52 }
 0xd66   :  { %v4626_v56 = vadd.f32 %v4620_v53, %v4592_v29  ;;  %v4619_v59 = vmul.f32 0.044715, %v4613_v10  ;;  %v4616_v60 = vmul.f32 %v4610_v54, %v4602_v51  ;;  %v4609_v62 = vmul.f32 %v4597_v55, %v4597_v55 }
 0xd68   :  { %v4632_v5 = vmul.f32 0.7978846, %v4626_v56  ;;  %v4625_v6 = vadd.f32 %v4619_v59, %v4587_v46  ;;  %v4622_v9 = vmul.f32 0.044715, %v4616_v60  ;;  %v4615_v15 = vmul.f32 %v4609_v62, %v4597_v55 }
 0xd6a   :  { %5604 = vtanh.f32 %v4632_v5  ;;  %v4631_v13 = vmul.f32 0.7978846, %v4625_v6  ;;  %v4628_v17 = vadd.f32 %v4622_v9, %v4602_v51  ;;  %v4621_v20 = vmul.f32 0.044715, %v4615_v15 }
 0xd6c   :  { %5606 = vtanh.f32 %v4631_v13  ;;  %v4634_v26 = vmul.f32 0.7978846, %v4628_v17  ;;  %v4627_v19 = vadd.f32 %v4621_v20, %v4597_v55 }
 0xd6e   :  { %v5601_v27 = vpop.eup %5600  ;;  %5608 = vtanh.f32 %v4634_v26  ;;  %v4633_v30 = vmul.f32 0.7978846, %v4627_v19 }
 0xd6f   :  { %v4642_v31 = vadd.f32 1.0, %v5601_v27 }
 0xd70   :  { %v5603_v32 = vpop.eup %5602  ;;  %5610 = vtanh.f32 %v4633_v30 }
 0xd71   :  { %v4641_v33 = vadd.f32 1.0, %v5603_v32  ;;  %v4648_v34 = vmul.f32 0.5, %v4642_v31 }
 0xd73   :  { %v4647_v36 = vmul.f32 0.5, %v4641_v33  ;;  %v4654_v40 = vmul.f32 %v4648_v34, %v4582_v2 }
 0xd75   :  { %v4653_v38 = vmul.f32 %v4647_v36, %v4577_v61 }
 0xd77   :  { %v5605_v41 = vpop.eup %5604  ;;  %5459 = vmatprep.mubr.msk.f32.mxu0 %vm4674_vm5, %v4653_v38 }
 0xd78   :  { %5460 = vmatmul.mubr.msk.f32.vlgmr.msra.gmra.mxu0 %vm4674_vm5, %v4654_v40  ;;  %v4644_v42 = vadd.f32 1.0, %v5605_v41 }
 0xd79   :  { %v5607_v22 = vpop.eup %5606 }
 0xd7a   :  { %v4643_v63 = vadd.f32 1.0, %v5607_v22  ;;  %v4650_v58 = vmul.f32 0.5, %v4644_v42 }
 0xd7b   :  { %v5609_v23 = vpop.eup %5608 }
 0xd7c   :  { %v4649_v57 = vmul.f32 0.5, %v4643_v63  ;;  %v4646_v1 = vadd.f32 1.0, %v5609_v23  ;;  %v4656_v16 = vmul.f32 %v4650_v58, %v4592_v29 }
 0xd7d   :  { %v5611_v3 = vpop.eup %5610 }
 0xd7e   :  { %v4655_v12 = vmul.f32 %v4649_v57, %v4587_v46  ;;  %v4645_v11 = vadd.f32 1.0, %v5611_v3  ;;  %v4652_v7 = vmul.f32 0.5, %v4646_v1 }
 0xd80   :  { %5462 = vmatprep.mubr.msk.f32.mxu0 %vm4674_vm5, %v4655_v12  ;;  %v4651_v2 = vmul.f32 0.5, %v4645_v11  ;;  %v4658_v14 = vmul.f32 %v4652_v7, %v4602_v51 }
 0xd81   :  { %5463 = vmatmul.mubr.msk.f32.gmra.mxu0 %vm4674_vm5, %v4656_v16 }
 0xd82   :  { %v4657_v61 = vmul.f32 %v4651_v2, %v4597_v55 }
 0xd84   :  { %5465 = vmatprep.mubr.msk.f32.mxu0 %vm4674_vm5, %v4657_v61 }
 0xd85   :  { %5466 = vmatmul.mubr.msk.f32.gmra.mxu0 %vm4674_vm5, %v4658_v14 }
 0xe38   :  { %v5461_v0 = vpop.f32.mrf.mxu0 }
 0xe39   :  { %v4765_v24 = vadd.f32 %v5461_v0, %v5003_v4 }
 0xe3a   :  { %v4759_v25 = vpop.f32.mrf.mxu0 }
 0xe3b   :  { %v4789_v29 = vadd.f32 %v4765_v24, %v6318_v21  ;;  %v4760_v43 = vadd.f32 %v5003_v4, %v4759_v25 }
 0xe3d   :  { %v4788_v8 = vadd.f32 %v4760_v43, %v6316_v18  ;;  %v4799_v44 = vsel %vm61_vm0, %v4789_v29, 0.0 }
 0xe3e   :  { %4800 = vadd.xlane.f32.xlu0 %v4799_v44 }
 0xe3f   :  { %v4796_v45 = vsel %vm61_vm0, %v4788_v8, 0.0 }
 0xe40   :  { %4797 = vadd.xlane.f32.xlu1 %v4796_v45 }
 0xe41   :  { %v5464_v46 = vpop.f32.mrf.mxu0 }
 0xe42   :  { %v4775_v47 = vadd.f32 %v5464_v46, %v5003_v4  ;;  %v5010_v46 = vld [vmem:[%s6444_s11] ss:$0 sm:$0xff] }
 0xe43   :  { %v4769_v48 = vpop.f32.mrf.mxu0 }
 0xe44   :  { %v4791_v49 = vadd.f32 %v4775_v47, %v6334_v37  ;;  %v4770_v50 = vadd.f32 %v5003_v4, %v4769_v48 }
 0xe45   :  { %v5467_v51 = vpop.f32.mrf.mxu0 }
 0xe46   :  { %v4790_v52 = vadd.f32 %v4770_v50, %v6325_v28  ;;  %v4785_v53 = vadd.f32 %v5467_v51, %v5003_v4  ;;  %v4805_v21 = vsel %vm61_vm0, %v4791_v49, 0.0  ;;  %v5011_v50 = vld [vmem:[%s6445_s12] ss:$0 sm:$0xff] }
 0xe47   :  { %4806 = vadd.xlane.f32.xlu0 %v4805_v21  ;;  %v4779_v18 = vpop.f32.mrf.mxu0 }
 0xe48   :  { %v4793_v10 = vadd.f32 %v4785_v53, %v6340_v39  ;;  %v4780_v54 = vadd.f32 %v5003_v4, %v4779_v18  ;;  %v4802_v55 = vsel %vm61_vm0, %v4790_v52, 0.0 }
 0xe49   :  { %4803 = vadd.xlane.f32.xlu1 %v4802_v55 }
 0xe4a   :  { %v4792_v56 = vadd.f32 %v4780_v54, %v6331_v35  ;;  %v4811_v59 = vsel %vm61_vm0, %v4793_v10, 0.0 }
 0xe4b   :  { %4812 = vadd.xlane.f32.xlu0 %v4811_v59 }
 0xe4c   :  { %v4808_v37 = vsel %vm61_vm0, %v4792_v56, 0.0 }
 0xe4d   :  { %4809 = vadd.xlane.f32.xlu1 %v4808_v37 }
 0xec7   :  { %v4801_v28 = vpop.xlane.xlu0 %4800 }
 0xec8   :  { %v4815_v60 = vmul.f32 0.03125, %v4801_v28 }
 0xec9   :  { %v4798_v62 = vpop.xlane.xlu1 %4797 }
 0xeca   :  { %v4821_v5 = vsub.f32 %v4789_v29, %v4815_v60  ;;  %v4814_v6 = vmul.f32 0.03125, %v4798_v62 }
 0xecc   :  { %v6392_v9 = vsub.f32 %v4788_v8, %v4814_v6  ;;  %v4827_v39 = vmul.f32 %v4821_v5, %v4821_v5 }
 0xece   :  { %v4835_v15 = vsel %vm61_vm0, %v4827_v39, 0.0  ;;  %v4826_v13 = vmul.f32 %v6392_v9, %v6392_v9 }
 0xecf   :  { %4836 = vadd.xlane.f32.xlu0 %v4835_v15 }
 0xed0   :  { %v4807_v35 = vpop.xlane.xlu0 %4806  ;;  %v4832_v17 = vsel %vm61_vm0, %v4826_v13, 0.0 }
 0xed1   :  { %v4817_v20 = vmul.f32 0.03125, %v4807_v35  ;;  %4833 = vadd.xlane.f32.xlu1 %v4832_v17 }
 0xed2   :  { %v4804_v26 = vpop.xlane.xlu1 %4803 }
 0xed3   :  { %v4823_v19 = vsub.f32 %v4791_v49, %v4817_v20  ;;  %v4816_v27 = vmul.f32 0.03125, %v4804_v26 }
 0xed4   :  { %v4813_v30 = vpop.xlane.xlu0 %4812 }
 0xed5   :  { %v4822_v31 = vsub.f32 %v4790_v52, %v4816_v27  ;;  %v4819_v32 = vmul.f32 0.03125, %v4813_v30  ;;  %v4829_v33 = vmul.f32 %v4823_v19, %v4823_v19 }
 0xed6   :  { %v4810_v34 = vpop.xlane.xlu1 %4809 }
 0xed7   :  { %v4825_v36 = vsub.f32 %v4793_v10, %v4819_v32  ;;  %v4818_v38 = vmul.f32 0.03125, %v4810_v34  ;;  %v4841_v40 = vsel %vm61_vm0, %v4829_v33, 0.0  ;;  %v4828_v41 = vmul.f32 %v4822_v31, %v4822_v31 }
 0xed8   :  { %4842 = vadd.xlane.f32.xlu0 %v4841_v40 }
 0xed9   :  { %v4824_v42 = vsub.f32 %v4792_v56, %v4818_v38  ;;  %v4838_v22 = vsel %vm61_vm0, %v4828_v41, 0.0  ;;  %v4831_v63 = vmul.f32 %v4825_v36, %v4825_v36 }
 0xeda   :  { %4839 = vadd.xlane.f32.xlu1 %v4838_v22 }
 0xedb   :  { %v4847_v23 = vsel %vm61_vm0, %v4831_v63, 0.0  ;;  %v4830_v58 = vmul.f32 %v4824_v42, %v4824_v42 }
 0xedc   :  { %4848 = vadd.xlane.f32.xlu0 %v4847_v23 }
 0xedd   :  { %v4844_v57 = vsel %vm61_vm0, %v4830_v58, 0.0 }
 0xede   :  { %4845 = vadd.xlane.f32.xlu1 %v4844_v57 }
 0xf58   :  { %v4837_v1 = vpop.xlane.xlu0 %4836 }
 0xf59   :  { %v4851_v3 = vmul.f32 0.03125, %v4837_v1 }
 0xf5a   :  { %v4834_v12 = vpop.xlane.xlu1 %4833 }
 0xf5b   :  { %v4857_v11 = vadd.f32 1e-12, %v4851_v3  ;;  %v4850_v16 = vmul.f32 0.03125, %v4834_v12 }
 0xf5d   :  { %5612 = vrsqrt.f32 %v4857_v11  ;;  %v4856_v7 = vadd.f32 1e-12, %v4850_v16 }
 0xf5f   :  { %5614 = vrsqrt.f32 %v4856_v7 }
 0xf61   :  { %v4843_v2 = vpop.xlane.xlu0 %4842 }
 0xf62   :  { %v4853_v61 = vmul.f32 0.03125, %v4843_v2 }
 0xf63   :  { %v4840_v14 = vpop.xlane.xlu1 %4839 }
 0xf64   :  { %v4859_v4 = vadd.f32 1e-12, %v4853_v61  ;;  %v4852_v0 = vmul.f32 0.03125, %v4840_v14 }
 0xf65   :  { %v4849_v24 = vpop.xlane.xlu0 %4848 }
 0xf66   :  { %5616 = vrsqrt.f32 %v4859_v4  ;;  %v4858_v25 = vadd.f32 1e-12, %v4852_v0  ;;  %v4855_v29 = vmul.f32 0.03125, %v4849_v24 }
 0xf67   :  { %v4846_v43 = vpop.xlane.xlu1 %4845 }
 0xf68   :  { %5618 = vrsqrt.f32 %v4858_v25  ;;  %v4861_v8 = vadd.f32 1e-12, %v4855_v29  ;;  %v4854_v44 = vmul.f32 0.03125, %v4846_v43 }
 0xf6a   :  { %v5613_v45 = vpop.eup %5612  ;;  %5620 = vrsqrt.f32 %v4861_v8  ;;  %v4860_v47 = vadd.f32 1e-12, %v4854_v44 }
 0xf6b   :  { %v4869_v48 = vmul.f32 %v5613_v45, %v4821_v5 }
 0xf6c   :  { %v5615_v49 = vpop.eup %5614  ;;  %5622 = vrsqrt.f32 %v4860_v47 }
 0xf6d   :  { %v4881_v51 = vmul.f32 %v5010_v46, %v4869_v48  ;;  %v4868_v52 = vmul.f32 %v5615_v49, %v6392_v9 }
 0xf6f   :  { %v4893_v53 = vadd.f32 %v5011_v50, %v4881_v51  ;;  %v4880_v21 = vmul.f32 %v5010_v46, %v4868_v52 }
 0xf71   :  { %4899 = vst.msk [vmem:[%s6446_s13 + $0x8] sm:$0xff] %vm61_vm0, %v4893_v53  ;;  %v4892_v18 = vadd.f32 %v5011_v50, %v4880_v21 }
 0xf73   :  { %v5617_v10 = vpop.eup %5616  ;;  %4898 = vst.msk [vmem:[%s6446_s13] sm:$0xff] %vm61_vm0, %v4892_v18 }
 0xf74   :  { %v4871_v54 = vmul.f32 %v5617_v10, %v4823_v19 }
 0xf75   :  { %v5619_v55 = vpop.eup %5618 }
 0xf76   :  { %v4883_v56 = vmul.f32 %v5010_v46, %v4871_v54  ;;  %v4870_v59 = vmul.f32 %v5619_v55, %v4822_v31 }
 0xf77   :  { %v5621_v37 = vpop.eup %5620 }
 0xf78   :  { %v4895_v28 = vadd.f32 %v5011_v50, %v4883_v56  ;;  %v4882_v60 = vmul.f32 %v5010_v46, %v4870_v59  ;;  %v4873_v62 = vmul.f32 %v5621_v37, %v4825_v36 }
 0xf79   :  { %v5623_v5 = vpop.eup %5622 }
 0xf7a   :  { %4901 = vst.msk [vmem:[%s6446_s13 + $0x18] sm:$0xff] %vm61_vm0, %v4895_v28  ;;  %v4894_v6 = vadd.f32 %v5011_v50, %v4882_v60  ;;  %v4885_v9 = vmul.f32 %v5010_v46, %v4873_v62  ;;  %v4872_v39 = vmul.f32 %v5623_v5, %v4824_v42 }
 0xf7c   :  { %4900 = vst.msk [vmem:[%s6446_s13 + $0x10] sm:$0xff] %vm61_vm0, %v4894_v6  ;;  %v4897_v15 = vadd.f32 %v5011_v50, %v4885_v9  ;;  %v4884_v13 = vmul.f32 %v5010_v46, %v4872_v39 }
 0xf7e   :  { %4903 = vst.msk [vmem:[%s6446_s13 + $0x28] sm:$0xff] %vm61_vm0, %v4897_v15  ;;  %v4896_v35 = vadd.f32 %v5011_v50, %v4884_v13 }
 0xf80   :  { %4902 = vst.msk [vmem:[%s6446_s13 + $0x20] sm:$0xff] %vm61_vm0, %v4896_v35 }

</bundles_post_ra>
